<compile_context>
chip_gen: v7x
topology: tpu7x:2x2x1
jax: 0.10.0
libtpu: 0.0.40
codegen_flags: <defaults>
</compile_context>

<pallas_src>
import math
import functools

import jax
import jax.numpy as jnp
import numpy as np
from jax.experimental import pallas as pl
from jax.experimental.pallas import tpu as pltpu


# ----------------------------------------------------------------------------
# Pallas kernel: one EncoderBlock on a (batch_tile*T, C) row slab per grid step.
# ----------------------------------------------------------------------------
def _encoder_block_kernel(
    x_ref, scale_ref, shift_ref,
    wqkv_ref, bqkv_ref,
    wp_ref, bp_ref,
    g2_ref, beta2_ref,
    w1_ref, b1_ref, w2_ref, b2_ref,
    out_ref,
    y_buf,                                   # VMEM scratch (rows, C) f32
    *, n_head, seq_len, batch_tile, compute_dtype):
    eps = 1e-5
    cd = compute_dtype

    x = x_ref[...]                           # (rows, C) f32
    rows, C = x.shape
    hd = C // n_head

    # ---------------- AdaLayerNorm (scale/shift precomputed per row) ----------
    mu = jnp.mean(x, axis=-1, keepdims=True)
    var = jnp.mean((x - mu) ** 2, axis=-1, keepdims=True)
    h = (x - mu) * jax.lax.rsqrt(var + eps)
    h = h * (1.0 + scale_ref[...]) + shift_ref[...]

    # ---------------- fused QKV projection (single MXU matmul, N = 3C) --------
    qkv = jnp.dot(h.astype(cd), wqkv_ref[...],
                  preferred_element_type=jnp.float32) + bqkv_ref[...]
    q = qkv[:, 0 * C:1 * C]
    k = qkv[:, 1 * C:2 * C]
    v = qkv[:, 2 * C:3 * C]

    # ---------------- per-(batch, head) attention ------------------------------
    # TODO(synk): hd < 128 at these sizes -> sub-lane slices / small-K matmuls;
    # at production C, fold heads into a batched dot_general instead.
    inv_sqrt_d = 1.0 / math.sqrt(hd)
    for b in range(batch_tile):              # static unroll over batch tile
        r0 = b * seq_len
        for hh in range(n_head):             # static unroll over heads
            c0 = hh * hd
            qh = q[r0:r0 + seq_len, c0:c0 + hd]
            kh = k[r0:r0 + seq_len, c0:c0 + hd]
            vh = v[r0:r0 + seq_len, c0:c0 + hd]
            s = jax.lax.dot_general(
                qh.astype(cd), kh.astype(cd), (((1,), (1,)), ((), ())),
                preferred_element_type=jnp.float32) * inv_sqrt_d
            s = s - jnp.max(s, axis=-1, keepdims=True)
            p = jnp.exp(s)
            p = p * pl.reciprocal(jnp.sum(p, axis=-1, keepdims=True), approx=True)
            # TODO(synk): attn_drop is identity here (eval-mode dropout)
            yh = jnp.dot(p.astype(cd), vh.astype(cd),
                         preferred_element_type=jnp.float32)
            y_buf[pl.ds(r0, seq_len), pl.ds(c0, hd)] = yh     # write into slab

    y = y_buf[...]
    attn_out = jnp.dot(y.astype(cd), wp_ref[...],
                       preferred_element_type=jnp.float32) + bp_ref[...]

    # ---------------- residual 1 ----------------
    x1 = x + attn_out

    # ---------------- LayerNorm 2 (affine) ----------------
    mu2 = jnp.mean(x1, axis=-1, keepdims=True)
    var2 = jnp.mean((x1 - mu2) ** 2, axis=-1, keepdims=True)
    h2 = (x1 - mu2) * jax.lax.rsqrt(var2 + eps)
    h2 = h2 * g2_ref[...] + beta2_ref[...]

    # ---------------- MLP (exact erf GELU) ----------------
    m = jnp.dot(h2.astype(cd), w1_ref[...],
                preferred_element_type=jnp.float32) + b1_ref[...]
    m = 0.5 * m * (1.0 + jax.lax.erf(m * (1.0 / math.sqrt(2.0))))
    m = jnp.dot(m.astype(cd), w2_ref[...],
                preferred_element_type=jnp.float32) + b2_ref[...]

    # ---------------- residual 2 ----------------
    out_ref[...] = x1 + m


# ----------------------------------------------------------------------------
# Wrapper helpers
# ----------------------------------------------------------------------------
def _pick_batch_tile(B, T, target_rows=256):
    bt = 1
    for d in range(1, B + 1):
        if B % d == 0 and d * T <= target_rows:
            bt = d
    return bt


def _vmem_budget_bytes(rows, C, H, compute_dtype, single_buffer_weights):
    wsize = np.dtype(compute_dtype).itemsize
    wbuf = 1 if single_buffer_weights else 2
    weights = (C * 3 * C + C * C + C * H + H * C) * wsize * wbuf
    biases = (3 * C + C + 2 * C + H + C) * 4 * wbuf
    act_blocks = 4 * rows * C * 4 * 2        # x, scale, shift, out (double-buffered)
    scratch = rows * C * 4                   # y_buf
    live = rows * (3 * C + H + 4 * C) * 4    # qkv + mlp hidden + temporaries
    total = weights + biases + act_blocks + scratch + live
    budget = int(total * 1.5) + (4 << 20)
    # cap at 64 MiB so the same budget also fits v7x physical VMEM
    return int(min(max(budget, 16 << 20), 64 << 20))


def _encoder_block_call(x2d, scale, shift, wqkv, bqkv, wp, bp, g2, beta2,
                        w1, b1, w2, b2, *, n_head, seq_len, batch_tile,
                        compute_dtype, single_buffer_weights):
    rows_total, C = x2d.shape
    rows = batch_tile * seq_len
    grid = (rows_total // rows,)
    H = w1.shape[1]

    def act_spec():
        return pl.BlockSpec((rows, C), lambda g: (g, 0))

    def const_spec(shape):
        if single_buffer_weights:
            # weights never change across grid steps -> single-buffer them
            return pl.BlockSpec(shape, lambda g: (0, 0),
                                pipeline_mode=pl.Buffered(1))
        return pl.BlockSpec(shape, lambda g: (0, 0))

    in_specs = [
        act_spec(), act_spec(), act_spec(),          # x, scale, shift
        const_spec((C, 3 * C)), const_spec((1, 3 * C)),   # fused qkv
        const_spec((C, C)), const_spec((1, C)),           # proj
        const_spec((1, C)), const_spec((1, C)),           # ln2 gamma, beta
        const_spec((C, H)), const_spec((1, H)),           # mlp fc1
        const_spec((H, C)), const_spec((1, C)),           # mlp fc2
    ]
    out_specs = act_spec()

    kernel = functools.partial(
        _encoder_block_kernel, n_head=n_head, seq_len=seq_len,
        batch_tile=batch_tile, compute_dtype=compute_dtype)

    return pl.pallas_call(
        kernel,
        out_shape=jax.ShapeDtypeStruct((rows_total, C), jnp.float32),
        grid_spec=pltpu.PrefetchScalarGridSpec(
            num_scalar_prefetch=0,
            grid=grid,
            in_specs=in_specs,
            out_specs=out_specs,
            scratch_shapes=[pltpu.VMEM((rows, C), jnp.float32)],
        ),
        compiler_params=pltpu.CompilerParams(
            dimension_semantics=("parallel",),
            vmem_limit_bytes=_vmem_budget_bytes(
                rows, C, H, compute_dtype, single_buffer_weights)),
    )(x2d, scale, shift, wqkv, bqkv, wp, bp, g2, beta2, w1, b1, w2, b2)


def _encoder_pallas(x, timestep, layers, n_head, compute_dtype,
                    single_buffer_weights):
    B, T, C = x.shape
    cd = compute_dtype

    # Sinusoidal timestep embedding (tiny, glue-level compute in the wrapper).
    half = C // 2
    freqs = jnp.exp(jnp.arange(half, dtype=jnp.float32)
                    * (-math.log(10000.0) / (half - 1)))
    e = timestep.astype(jnp.float32)[:, None] * freqs[None, :]
    emb = jnp.concatenate([jnp.sin(e), jnp.cos(e)], axis=-1)      # (B, C)
    silu_emb = emb * jax.nn.sigmoid(emb)

    bt = _pick_batch_tile(B, T)
    x2d = x.reshape(B * T, C)

    # TODO(synk): padding_masks / label_emb are not supported (None path only).
    for p in layers:
        # AdaLayerNorm modulation hoisted out of the kernel (M=1 matmul; keeps
        # the (C, 2C) weight out of VMEM), pre-broadcast to row granularity.
        ada = silu_emb @ p["w_ada"] + p["b_ada"]                  # (B, 2C)
        scale = jnp.repeat(ada[:, :C], T, axis=0)                 # (B*T, C)
        shift = jnp.repeat(ada[:, C:], T, axis=0)
        # Fused QKV weight; matmul operands cast to the MXU compute dtype.
        wqkv = jnp.concatenate([p["wq"], p["wk"], p["wv"]], axis=1).astype(cd)
        bqkv = jnp.concatenate([p["bq"], p["bk"], p["bv"]], axis=1)
        x2d = _encoder_block_call(
            x2d, scale, shift, wqkv, bqkv,
            p["wp"].astype(cd), p["bp"], p["g2"], p["beta2"],
            p["w1"].astype(cd), p["b1"], p["w2"].astype(cd), p["b2"],
            n_head=n_head, seq_len=T, batch_tile=bt,
            compute_dtype=cd, single_buffer_weights=single_buffer_weights)
    return x2d.reshape(B, T, C)


def encoder_pallas(x, timestep, layers, n_head, compute_dtype=jnp.bfloat16):
    try:
        return _encoder_pallas(x, timestep, layers, n_head, compute_dtype,
                               single_buffer_weights=True)
    except Exception:
        # TODO(synk): pl.Buffered(1) not accepted on this jax build; fall back
        # to default double-buffered weight blocks.
        return _encoder_pallas(x, timestep, layers, n_head, compute_dtype,
                               single_buffer_weights=False)


# ----------------------------------------------------------------------------
# Pure-JAX reference (mirrors the PyTorch Encoder forward, eval-mode dropout)
# ----------------------------------------------------------------------------
def encoder_ref(x, timestep, layers, n_head):
    B, T, C = x.shape
    hd = C // n_head
    eps = 1e-5

    half = C // 2
    freqs = jnp.exp(jnp.arange(half, dtype=jnp.float32)
                    * (-math.log(10000.0) / (half - 1)))
    e = timestep.astype(jnp.float32)[:, None] * freqs[None, :]
    emb = jnp.concatenate([jnp.sin(e), jnp.cos(e)], axis=-1)      # (B, C)
    silu = emb * jax.nn.sigmoid(emb)

    for p in layers:
        ada = silu @ p["w_ada"] + p["b_ada"]
        scale, shift = ada[:, :C], ada[:, C:]

        mu = jnp.mean(x, -1, keepdims=True)
        var = jnp.mean((x - mu) ** 2, -1, keepdims=True)
        h = (x - mu) / jnp.sqrt(var + eps)
        h = h * (1.0 + scale[:, None, :]) + shift[:, None, :]

        q = (h @ p["wq"] + p["bq"]).reshape(B, T, n_head, hd).transpose(0, 2, 1, 3)
        k = (h @ p["wk"] + p["bk"]).reshape(B, T, n_head, hd).transpose(0, 2, 1, 3)
        v = (h @ p["wv"] + p["bv"]).reshape(B, T, n_head, hd).transpose(0, 2, 1, 3)
        att = jnp.einsum("bhtd,bhsd->bhts", q, k) / math.sqrt(hd)
        att = jax.nn.softmax(att, axis=-1)
        y = jnp.einsum("bhts,bhsd->bhtd", att, v).transpose(0, 2, 1, 3).reshape(B, T, C)
        y = y @ p["wp"] + p["bp"]

        x = x + y
        mu2 = jnp.mean(x, -1, keepdims=True)
        var2 = jnp.mean((x - mu2) ** 2, -1, keepdims=True)
        h2 = (x - mu2) / jnp.sqrt(var2 + eps) * p["g2"] + p["beta2"]
        m = h2 @ p["w1"] + p["b1"]
        m = 0.5 * m * (1.0 + jax.lax.erf(m / jnp.sqrt(2.0)))
        m = m @ p["w2"] + p["b2"]
        x = x + m
    return x


# ----------------------------------------------------------------------------
if __name__ == "__main__":
    B, T, C = 2, 8, 32
    n_head = 4
    n_layer = 2
    H = 4 * C  # mlp_hidden_times = 4

    key = jax.random.PRNGKey(0)

    def w(k, shape):
        return (0.02 * jax.random.normal(k, shape)).astype(jnp.float32)

    layers = []
    for l in range(n_layer):
        ks = jax.random.split(jax.random.fold_in(key, l), 14)
        layers.append({
            "w_ada": w(ks[0], (C, 2 * C)), "b_ada": w(ks[1], (1, 2 * C)),
            "wq": w(ks[2], (C, C)), "bq": w(ks[3], (1, C)),
            "wk": w(ks[4], (C, C)), "bk": w(ks[5], (1, C)),
            "wv": w(ks[6], (C, C)), "bv": w(ks[7], (1, C)),
            "wp": w(ks[8], (C, C)), "bp": w(ks[9], (1, C)),
            "g2": jnp.ones((1, C), jnp.float32),
            "beta2": jnp.zeros((1, C), jnp.float32),
            "w1": w(ks[10], (C, H)), "b1": w(ks[11], (1, H)),
            "w2": w(ks[12], (H, C)), "b2": w(ks[13], (1, C)),
        })

    x = jax.random.normal(jax.random.fold_in(key, 100), (B, T, C), dtype=jnp.float32)
    timestep = jnp.array([3.0, 17.0], dtype=jnp.float32)

    out_ref = encoder_ref(x, timestep, layers, n_head)

    # exact path: f32 matmuls (tolerance covers approx softmax reciprocal)
    out_f32 = encoder_pallas(x, timestep, layers, n_head, compute_dtype=jnp.float32)
    jax.block_until_ready(out_f32)
    np.testing.assert_allclose(np.asarray(out_f32), np.asarray(out_ref),
                               rtol=2e-3, atol=2e-3)

    # fast path: bf16 MXU inputs with f32 accumulation
    out_bf16 = encoder_pallas(x, timestep, layers, n_head, compute_dtype=jnp.bfloat16)
    jax.block_until_ready(out_bf16)
    np.testing.assert_allclose(np.asarray(out_bf16), np.asarray(out_ref),
                               rtol=3e-2, atol=3e-2)

    print("KERNEL_OK")
</pallas_src>

<mosaic_0001>
module attributes {stable_mosaic.version = 11 : i64} {
  func.func @_encoder_block_kernel(%arg0: i32, %arg1: memref<16x32xf32, #tpu.memory_space<vmem>>, %arg2: memref<16x32xf32, #tpu.memory_space<vmem>>, %arg3: memref<16x32xf32, #tpu.memory_space<vmem>>, %arg4: memref<32x96xf32, #tpu.memory_space<vmem>>, %arg5: memref<1x96xf32, #tpu.memory_space<vmem>>, %arg6: memref<32x32xf32, #tpu.memory_space<vmem>>, %arg7: memref<1x32xf32, #tpu.memory_space<vmem>>, %arg8: memref<1x32xf32, #tpu.memory_space<vmem>>, %arg9: memref<1x32xf32, #tpu.memory_space<vmem>>, %arg10: memref<32x128xf32, #tpu.memory_space<vmem>>, %arg11: memref<1x128xf32, #tpu.memory_space<vmem>>, %arg12: memref<128x32xf32, #tpu.memory_space<vmem>>, %arg13: memref<1x32xf32, #tpu.memory_space<vmem>>, %arg14: memref<16x32xf32, #tpu.memory_space<vmem>>, %arg15: memref<16x32xf32, #tpu.memory_space<vmem>>) attributes {dimension_semantics = [#tpu.dimension_semantics<parallel>], iteration_bounds = array<i64: 1>, scalar_prefetch = 0 : i64, scratch_operands = 1 : i64, tpu.core_type = #tpu.core_type<tc>, window_params = [{transform_indices = @transform_0, window_bounds = array<i64: 16, 32>}, {transform_indices = @transform_1, window_bounds = array<i64: 16, 32>}, {transform_indices = @transform_2, window_bounds = array<i64: 16, 32>}, {pipeline_mode = #tpu.pipeline_mode<synchronous>, transform_indices = @transform_3, window_bounds = array<i64: 32, 96>}, {pipeline_mode = #tpu.pipeline_mode<synchronous>, transform_indices = @transform_4, window_bounds = array<i64: 1, 96>}, {pipeline_mode = #tpu.pipeline_mode<synchronous>, transform_indices = @transform_5, window_bounds = array<i64: 32, 32>}, {pipeline_mode = #tpu.pipeline_mode<synchronous>, transform_indices = @transform_6, window_bounds = array<i64: 1, 32>}, {pipeline_mode = #tpu.pipeline_mode<synchronous>, transform_indices = @transform_7, window_bounds = array<i64: 1, 32>}, {pipeline_mode = #tpu.pipeline_mode<synchronous>, transform_indices = @transform_8, window_bounds = array<i64: 1, 32>}, {pipeline_mode = #tpu.pipeline_mode<synchronous>, transform_indices = @transform_9, window_bounds = array<i64: 32, 128>}, {pipeline_mode = #tpu.pipeline_mode<synchronous>, transform_indices = @transform_10, window_bounds = array<i64: 1, 128>}, {pipeline_mode = #tpu.pipeline_mode<synchronous>, transform_indices = @transform_11, window_bounds = array<i64: 128, 32>}, {pipeline_mode = #tpu.pipeline_mode<synchronous>, transform_indices = @transform_12, window_bounds = array<i64: 1, 32>}, {transform_indices = @transform_13, window_bounds = array<i64: 16, 32>}]} {
    %c0 = arith.constant 0 : index
    %c0_0 = arith.constant 0 : index
    %0 = vector.load %arg1[%c0, %c0_0] : memref<16x32xf32, #tpu.memory_space<vmem>>, vector<16x32xf32>
    %cst = arith.constant dense<0.000000e+00> : vector<16xf32>
    %1 = vector.multi_reduction <add>, %0, %cst [1] : vector<16x32xf32> to vector<16xf32>
    %2 = vector.shape_cast %1 : vector<16xf32> to vector<16x1xf32>
    %cst_1 = arith.constant 3.200000e+01 : f32
    %3 = vector.broadcast %cst_1 : f32 to vector<16x1xf32>
    %4 = arith.divf %2, %3 : vector<16x1xf32>
    %5 = vector.broadcast %4 : vector<16x1xf32> to vector<16x32xf32>
    %6 = arith.subf %0, %5 : vector<16x32xf32>
    %7 = arith.mulf %6, %6 : vector<16x32xf32>
    %cst_2 = arith.constant dense<0.000000e+00> : vector<16xf32>
    %8 = vector.multi_reduction <add>, %7, %cst_2 [1] : vector<16x32xf32> to vector<16xf32>
    %9 = vector.shape_cast %8 : vector<16xf32> to vector<16x1xf32>
    %cst_3 = arith.constant 3.200000e+01 : f32
    %10 = vector.broadcast %cst_3 : f32 to vector<16x1xf32>
    %11 = arith.divf %9, %10 : vector<16x1xf32>
    %12 = vector.broadcast %4 : vector<16x1xf32> to vector<16x32xf32>
    %13 = arith.subf %0, %12 : vector<16x32xf32>
    %cst_4 = arith.constant 9.99999974E-6 : f32
    %14 = vector.broadcast %cst_4 : f32 to vector<16x1xf32>
    %15 = arith.addf %11, %14 : vector<16x1xf32>
    %16 = math.rsqrt %15 : vector<16x1xf32>
    %17 = vector.broadcast %16 : vector<16x1xf32> to vector<16x32xf32>
    %18 = arith.mulf %13, %17 : vector<16x32xf32>
    %c0_5 = arith.constant 0 : index
    %c0_6 = arith.constant 0 : index
    %19 = vector.load %arg2[%c0_5, %c0_6] : memref<16x32xf32, #tpu.memory_space<vmem>>, vector<16x32xf32>
    %cst_7 = arith.constant 1.000000e+00 : f32
    %20 = vector.broadcast %cst_7 : f32 to vector<16x32xf32>
    %21 = arith.addf %20, %19 : vector<16x32xf32>
    %22 = arith.mulf %18, %21 : vector<16x32xf32>
    %c0_8 = arith.constant 0 : index
    %c0_9 = arith.constant 0 : index
    %23 = vector.load %arg3[%c0_8, %c0_9] : memref<16x32xf32, #tpu.memory_space<vmem>>, vector<16x32xf32>
    %24 = arith.addf %22, %23 : vector<16x32xf32>
    %c0_10 = arith.constant 0 : index
    %c0_11 = arith.constant 0 : index
    %25 = vector.load %arg4[%c0_10, %c0_11] : memref<32x96xf32, #tpu.memory_space<vmem>>, vector<32x96xf32>
    %cst_12 = arith.constant dense<0.000000e+00> : vector<16x96xf32>
    %26 = tpu.matmul %24, %25, %cst_12 {dimension_numbers = #tpu.dot_dimension_numbers<[1], [0], [0], [1], [0, 0, 1, 1], [], []>} : vector<16x32xf32>, vector<32x96xf32>, vector<16x96xf32> -> vector<16x96xf32>
    %c0_13 = arith.constant 0 : index
    %c0_14 = arith.constant 0 : index
    %27 = vector.load %arg5[%c0_13, %c0_14] : memref<1x96xf32, #tpu.memory_space<vmem>>, vector<1x96xf32>
    %28 = vector.broadcast %27 : vector<1x96xf32> to vector<16x96xf32>
    %29 = arith.addf %26, %28 : vector<16x96xf32>
    %30 = vector.extract_strided_slice %29 {offsets = [0, 0], sizes = [16, 32], strides = [1, 1]} : vector<16x96xf32> to vector<16x32xf32>
    %31 = vector.extract_strided_slice %29 {offsets = [0, 32], sizes = [16, 32], strides = [1, 1]} : vector<16x96xf32> to vector<16x32xf32>
    %32 = vector.extract_strided_slice %29 {offsets = [0, 64], sizes = [16, 32], strides = [1, 1]} : vector<16x96xf32> to vector<16x32xf32>
    %33 = vector.extract_strided_slice %30 {offsets = [0, 0], sizes = [8, 8], strides = [1, 1]} : vector<16x32xf32> to vector<8x8xf32>
    %34 = vector.extract_strided_slice %31 {offsets = [0, 0], sizes = [8, 8], strides = [1, 1]} : vector<16x32xf32> to vector<8x8xf32>
    %35 = vector.extract_strided_slice %32 {offsets = [0, 0], sizes = [8, 8], strides = [1, 1]} : vector<16x32xf32> to vector<8x8xf32>
    %cst_15 = arith.constant dense<0.000000e+00> : vector<8x8xf32>
    %36 = tpu.matmul %33, %34, %cst_15 {dimension_numbers = #tpu.dot_dimension_numbers<[1], [1], [0], [0], [0, 0, 1, 0], [], []>} : vector<8x8xf32>, vector<8x8xf32>, vector<8x8xf32> -> vector<8x8xf32>
    %cst_16 = arith.constant 0.353553385 : f32
    %37 = vector.broadcast %cst_16 : f32 to vector<8x8xf32>
    %38 = arith.mulf %36, %37 : vector<8x8xf32>
    %cst_17 = arith.constant dense<0xFF800000> : vector<8xf32>
    %39 = vector.multi_reduction <maximumf>, %38, %cst_17 [1] : vector<8x8xf32> to vector<8xf32>
    %40 = vector.shape_cast %39 : vector<8xf32> to vector<8x1xf32>
    %41 = vector.broadcast %40 : vector<8x1xf32> to vector<8x8xf32>
    %42 = arith.subf %38, %41 : vector<8x8xf32>
    %43 = math.exp %42 : vector<8x8xf32>
    %cst_18 = arith.constant dense<0.000000e+00> : vector<8xf32>
    %44 = vector.multi_reduction <add>, %43, %cst_18 [1] : vector<8x8xf32> to vector<8xf32>
    %45 = vector.shape_cast %44 : vector<8xf32> to vector<8x1xf32>
    %46 = tpu.reciprocal %45 {approx = true} : vector<8x1xf32> -> vector<8x1xf32>
    %47 = vector.broadcast %46 : vector<8x1xf32> to vector<8x8xf32>
    %48 = arith.mulf %43, %47 : vector<8x8xf32>
    %cst_19 = arith.constant dense<0.000000e+00> : vector<8x8xf32>
    %49 = tpu.matmul %48, %35, %cst_19 {dimension_numbers = #tpu.dot_dimension_numbers<[1], [0], [0], [1], [0, 0, 1, 1], [], []>} : vector<8x8xf32>, vector<8x8xf32>, vector<8x8xf32> -> vector<8x8xf32>
    %c0_20 = arith.constant 0 : index
    %c0_21 = arith.constant 0 : index
    %50 = vector.load %arg15[%c0_20, %c0_21] : memref<16x32xf32, #tpu.memory_space<vmem>>, vector<8x8xf32>
    tpu.vector_store %arg15[%c0_20, %c0_21], %49 {strides = array<i32>} : memref<16x32xf32, #tpu.memory_space<vmem>>, vector<8x8xf32>,
    %51 = vector.extract_strided_slice %30 {offsets = [0, 8], sizes = [8, 8], strides = [1, 1]} : vector<16x32xf32> to vector<8x8xf32>
    %52 = vector.extract_strided_slice %31 {offsets = [0, 8], sizes = [8, 8], strides = [1, 1]} : vector<16x32xf32> to vector<8x8xf32>
    %53 = vector.extract_strided_slice %32 {offsets = [0, 8], sizes = [8, 8], strides = [1, 1]} : vector<16x32xf32> to vector<8x8xf32>
    %cst_22 = arith.constant dense<0.000000e+00> : vector<8x8xf32>
    %54 = tpu.matmul %51, %52, %cst_22 {dimension_numbers = #tpu.dot_dimension_numbers<[1], [1], [0], [0], [0, 0, 1, 0], [], []>} : vector<8x8xf32>, vector<8x8xf32>, vector<8x8xf32> -> vector<8x8xf32>
    %cst_23 = arith.constant 0.353553385 : f32
    %55 = vector.broadcast %cst_23 : f32 to vector<8x8xf32>
    %56 = arith.mulf %54, %55 : vector<8x8xf32>
    %cst_24 = arith.constant dense<0xFF800000> : vector<8xf32>
    %57 = vector.multi_reduction <maximumf>, %56, %cst_24 [1] : vector<8x8xf32> to vector<8xf32>
    %58 = vector.shape_cast %57 : vector<8xf32> to vector<8x1xf32>
    %59 = vector.broadcast %58 : vector<8x1xf32> to vector<8x8xf32>
    %60 = arith.subf %56, %59 : vector<8x8xf32>
    %61 = math.exp %60 : vector<8x8xf32>
    %cst_25 = arith.constant dense<0.000000e+00> : vector<8xf32>
    %62 = vector.multi_reduction <add>, %61, %cst_25 [1] : vector<8x8xf32> to vector<8xf32>
    %63 = vector.shape_cast %62 : vector<8xf32> to vector<8x1xf32>
    %64 = tpu.reciprocal %63 {approx = true} : vector<8x1xf32> -> vector<8x1xf32>
    %65 = vector.broadcast %64 : vector<8x1xf32> to vector<8x8xf32>
    %66 = arith.mulf %61, %65 : vector<8x8xf32>
    %cst_26 = arith.constant dense<0.000000e+00> : vector<8x8xf32>
    %67 = tpu.matmul %66, %53, %cst_26 {dimension_numbers = #tpu.dot_dimension_numbers<[1], [0], [0], [1], [0, 0, 1, 1], [], []>} : vector<8x8xf32>, vector<8x8xf32>, vector<8x8xf32> -> vector<8x8xf32>
    %c0_27 = arith.constant 0 : index
    %c8 = arith.constant 8 : index
    %68 = vector.load %arg15[%c0_27, %c8] : memref<16x32xf32, #tpu.memory_space<vmem>>, vector<8x8xf32>
    tpu.vector_store %arg15[%c0_27, %c8], %67 {strides = array<i32>} : memref<16x32xf32, #tpu.memory_space<vmem>>, vector<8x8xf32>,
    %69 = vector.extract_strided_slice %30 {offsets = [0, 16], sizes = [8, 8], strides = [1, 1]} : vector<16x32xf32> to vector<8x8xf32>
    %70 = vector.extract_strided_slice %31 {offsets = [0, 16], sizes = [8, 8], strides = [1, 1]} : vector<16x32xf32> to vector<8x8xf32>
    %71 = vector.extract_strided_slice %32 {offsets = [0, 16], sizes = [8, 8], strides = [1, 1]} : vector<16x32xf32> to vector<8x8xf32>
    %cst_28 = arith.constant dense<0.000000e+00> : vector<8x8xf32>
    %72 = tpu.matmul %69, %70, %cst_28 {dimension_numbers = #tpu.dot_dimension_numbers<[1], [1], [0], [0], [0, 0, 1, 0], [], []>} : vector<8x8xf32>, vector<8x8xf32>, vector<8x8xf32> -> vector<8x8xf32>
    %cst_29 = arith.constant 0.353553385 : f32
    %73 = vector.broadcast %cst_29 : f32 to vector<8x8xf32>
    %74 = arith.mulf %72, %73 : vector<8x8xf32>
    %cst_30 = arith.constant dense<0xFF800000> : vector<8xf32>
    %75 = vector.multi_reduction <maximumf>, %74, %cst_30 [1] : vector<8x8xf32> to vector<8xf32>
    %76 = vector.shape_cast %75 : vector<8xf32> to vector<8x1xf32>
    %77 = vector.broadcast %76 : vector<8x1xf32> to vector<8x8xf32>
    %78 = arith.subf %74, %77 : vector<8x8xf32>
    %79 = math.exp %78 : vector<8x8xf32>
    %cst_31 = arith.constant dense<0.000000e+00> : vector<8xf32>
    %80 = vector.multi_reduction <add>, %79, %cst_31 [1] : vector<8x8xf32> to vector<8xf32>
    %81 = vector.shape_cast %80 : vector<8xf32> to vector<8x1xf32>
    %82 = tpu.reciprocal %81 {approx = true} : vector<8x1xf32> -> vector<8x1xf32>
    %83 = vector.broadcast %82 : vector<8x1xf32> to vector<8x8xf32>
    %84 = arith.mulf %79, %83 : vector<8x8xf32>
    %cst_32 = arith.constant dense<0.000000e+00> : vector<8x8xf32>
    %85 = tpu.matmul %84, %71, %cst_32 {dimension_numbers = #tpu.dot_dimension_numbers<[1], [0], [0], [1], [0, 0, 1, 1], [], []>} : vector<8x8xf32>, vector<8x8xf32>, vector<8x8xf32> -> vector<8x8xf32>
    %c0_33 = arith.constant 0 : index
    %c16 = arith.constant 16 : index
    %86 = vector.load %arg15[%c0_33, %c16] : memref<16x32xf32, #tpu.memory_space<vmem>>, vector<8x8xf32>
    tpu.vector_store %arg15[%c0_33, %c16], %85 {strides = array<i32>} : memref<16x32xf32, #tpu.memory_space<vmem>>, vector<8x8xf32>,
    %87 = vector.extract_strided_slice %30 {offsets = [0, 24], sizes = [8, 8], strides = [1, 1]} : vector<16x32xf32> to vector<8x8xf32>
    %88 = vector.extract_strided_slice %31 {offsets = [0, 24], sizes = [8, 8], strides = [1, 1]} : vector<16x32xf32> to vector<8x8xf32>
    %89 = vector.extract_strided_slice %32 {offsets = [0, 24], sizes = [8, 8], strides = [1, 1]} : vector<16x32xf32> to vector<8x8xf32>
    %cst_34 = arith.constant dense<0.000000e+00> : vector<8x8xf32>
    %90 = tpu.matmul %87, %88, %cst_34 {dimension_numbers = #tpu.dot_dimension_numbers<[1], [1], [0], [0], [0, 0, 1, 0], [], []>} : vector<8x8xf32>, vector<8x8xf32>, vector<8x8xf32> -> vector<8x8xf32>
    %cst_35 = arith.constant 0.353553385 : f32
    %91 = vector.broadcast %cst_35 : f32 to vector<8x8xf32>
    %92 = arith.mulf %90, %91 : vector<8x8xf32>
    %cst_36 = arith.constant dense<0xFF800000> : vector<8xf32>
    %93 = vector.multi_reduction <maximumf>, %92, %cst_36 [1] : vector<8x8xf32> to vector<8xf32>
    %94 = vector.shape_cast %93 : vector<8xf32> to vector<8x1xf32>
    %95 = vector.broadcast %94 : vector<8x1xf32> to vector<8x8xf32>
    %96 = arith.subf %92, %95 : vector<8x8xf32>
    %97 = math.exp %96 : vector<8x8xf32>
    %cst_37 = arith.constant dense<0.000000e+00> : vector<8xf32>
    %98 = vector.multi_reduction <add>, %97, %cst_37 [1] : vector<8x8xf32> to vector<8xf32>
    %99 = vector.shape_cast %98 : vector<8xf32> to vector<8x1xf32>
    %100 = tpu.reciprocal %99 {approx = true} : vector<8x1xf32> -> vector<8x1xf32>
    %101 = vector.broadcast %100 : vector<8x1xf32> to vector<8x8xf32>
    %102 = arith.mulf %97, %101 : vector<8x8xf32>
    %cst_38 = arith.constant dense<0.000000e+00> : vector<8x8xf32>
    %103 = tpu.matmul %102, %89, %cst_38 {dimension_numbers = #tpu.dot_dimension_numbers<[1], [0], [0], [1], [0, 0, 1, 1], [], []>} : vector<8x8xf32>, vector<8x8xf32>, vector<8x8xf32> -> vector<8x8xf32>
    %c0_39 = arith.constant 0 : index
    %c24 = arith.constant 24 : index
    %104 = vector.load %arg15[%c0_39, %c24] : memref<16x32xf32, #tpu.memory_space<vmem>>, vector<8x8xf32>
    tpu.vector_store %arg15[%c0_39, %c24], %103 {strides = array<i32>} : memref<16x32xf32, #tpu.memory_space<vmem>>, vector<8x8xf32>,
    %105 = vector.extract_strided_slice %30 {offsets = [8, 0], sizes = [8, 8], strides = [1, 1]} : vector<16x32xf32> to vector<8x8xf32>
    %106 = vector.extract_strided_slice %31 {offsets = [8, 0], sizes = [8, 8], strides = [1, 1]} : vector<16x32xf32> to vector<8x8xf32>
    %107 = vector.extract_strided_slice %32 {offsets = [8, 0], sizes = [8, 8], strides = [1, 1]} : vector<16x32xf32> to vector<8x8xf32>
    %cst_40 = arith.constant dense<0.000000e+00> : vector<8x8xf32>
    %108 = tpu.matmul %105, %106, %cst_40 {dimension_numbers = #tpu.dot_dimension_numbers<[1], [1], [0], [0], [0, 0, 1, 0], [], []>} : vector<8x8xf32>, vector<8x8xf32>, vector<8x8xf32> -> vector<8x8xf32>
    %cst_41 = arith.constant 0.353553385 : f32
    %109 = vector.broadcast %cst_41 : f32 to vector<8x8xf32>
    %110 = arith.mulf %108, %109 : vector<8x8xf32>
    %cst_42 = arith.constant dense<0xFF800000> : vector<8xf32>
    %111 = vector.multi_reduction <maximumf>, %110, %cst_42 [1] : vector<8x8xf32> to vector<8xf32>
    %112 = vector.shape_cast %111 : vector<8xf32> to vector<8x1xf32>
    %113 = vector.broadcast %112 : vector<8x1xf32> to vector<8x8xf32>
    %114 = arith.subf %110, %113 : vector<8x8xf32>
    %115 = math.exp %114 : vector<8x8xf32>
    %cst_43 = arith.constant dense<0.000000e+00> : vector<8xf32>
    %116 = vector.multi_reduction <add>, %115, %cst_43 [1] : vector<8x8xf32> to vector<8xf32>
    %117 = vector.shape_cast %116 : vector<8xf32> to vector<8x1xf32>
    %118 = tpu.reciprocal %117 {approx = true} : vector<8x1xf32> -> vector<8x1xf32>
    %119 = vector.broadcast %118 : vector<8x1xf32> to vector<8x8xf32>
    %120 = arith.mulf %115, %119 : vector<8x8xf32>
    %cst_44 = arith.constant dense<0.000000e+00> : vector<8x8xf32>
    %121 = tpu.matmul %120, %107, %cst_44 {dimension_numbers = #tpu.dot_dimension_numbers<[1], [0], [0], [1], [0, 0, 1, 1], [], []>} : vector<8x8xf32>, vector<8x8xf32>, vector<8x8xf32> -> vector<8x8xf32>
    %c8_45 = arith.constant 8 : index
    %c0_46 = arith.constant 0 : index
    %122 = vector.load %arg15[%c8_45, %c0_46] : memref<16x32xf32, #tpu.memory_space<vmem>>, vector<8x8xf32>
    tpu.vector_store %arg15[%c8_45, %c0_46], %121 {strides = array<i32>} : memref<16x32xf32, #tpu.memory_space<vmem>>, vector<8x8xf32>,
    %123 = vector.extract_strided_slice %30 {offsets = [8, 8], sizes = [8, 8], strides = [1, 1]} : vector<16x32xf32> to vector<8x8xf32>
    %124 = vector.extract_strided_slice %31 {offsets = [8, 8], sizes = [8, 8], strides = [1, 1]} : vector<16x32xf32> to vector<8x8xf32>
    %125 = vector.extract_strided_slice %32 {offsets = [8, 8], sizes = [8, 8], strides = [1, 1]} : vector<16x32xf32> to vector<8x8xf32>
    %cst_47 = arith.constant dense<0.000000e+00> : vector<8x8xf32>
    %126 = tpu.matmul %123, %124, %cst_47 {dimension_numbers = #tpu.dot_dimension_numbers<[1], [1], [0], [0], [0, 0, 1, 0], [], []>} : vector<8x8xf32>, vector<8x8xf32>, vector<8x8xf32> -> vector<8x8xf32>
    %cst_48 = arith.constant 0.353553385 : f32
    %127 = vector.broadcast %cst_48 : f32 to vector<8x8xf32>
    %128 = arith.mulf %126, %127 : vector<8x8xf32>
    %cst_49 = arith.constant dense<0xFF800000> : vector<8xf32>
    %129 = vector.multi_reduction <maximumf>, %128, %cst_49 [1] : vector<8x8xf32> to vector<8xf32>
    %130 = vector.shape_cast %129 : vector<8xf32> to vector<8x1xf32>
    %131 = vector.broadcast %130 : vector<8x1xf32> to vector<8x8xf32>
    %132 = arith.subf %128, %131 : vector<8x8xf32>
    %133 = math.exp %132 : vector<8x8xf32>
    %cst_50 = arith.constant dense<0.000000e+00> : vector<8xf32>
    %134 = vector.multi_reduction <add>, %133, %cst_50 [1] : vector<8x8xf32> to vector<8xf32>
    %135 = vector.shape_cast %134 : vector<8xf32> to vector<8x1xf32>
    %136 = tpu.reciprocal %135 {approx = true} : vector<8x1xf32> -> vector<8x1xf32>
    %137 = vector.broadcast %136 : vector<8x1xf32> to vector<8x8xf32>
    %138 = arith.mulf %133, %137 : vector<8x8xf32>
    %cst_51 = arith.constant dense<0.000000e+00> : vector<8x8xf32>
    %139 = tpu.matmul %138, %125, %cst_51 {dimension_numbers = #tpu.dot_dimension_numbers<[1], [0], [0], [1], [0, 0, 1, 1], [], []>} : vector<8x8xf32>, vector<8x8xf32>, vector<8x8xf32> -> vector<8x8xf32>
    %c8_52 = arith.constant 8 : index
    %c8_53 = arith.constant 8 : index
    %140 = vector.load %arg15[%c8_52, %c8_53] : memref<16x32xf32, #tpu.memory_space<vmem>>, vector<8x8xf32>
    tpu.vector_store %arg15[%c8_52, %c8_53], %139 {strides = array<i32>} : memref<16x32xf32, #tpu.memory_space<vmem>>, vector<8x8xf32>,
    %141 = vector.extract_strided_slice %30 {offsets = [8, 16], sizes = [8, 8], strides = [1, 1]} : vector<16x32xf32> to vector<8x8xf32>
    %142 = vector.extract_strided_slice %31 {offsets = [8, 16], sizes = [8, 8], strides = [1, 1]} : vector<16x32xf32> to vector<8x8xf32>
    %143 = vector.extract_strided_slice %32 {offsets = [8, 16], sizes = [8, 8], strides = [1, 1]} : vector<16x32xf32> to vector<8x8xf32>
    %cst_54 = arith.constant dense<0.000000e+00> : vector<8x8xf32>
    %144 = tpu.matmul %141, %142, %cst_54 {dimension_numbers = #tpu.dot_dimension_numbers<[1], [1], [0], [0], [0, 0, 1, 0], [], []>} : vector<8x8xf32>, vector<8x8xf32>, vector<8x8xf32> -> vector<8x8xf32>
    %cst_55 = arith.constant 0.353553385 : f32
    %145 = vector.broadcast %cst_55 : f32 to vector<8x8xf32>
    %146 = arith.mulf %144, %145 : vector<8x8xf32>
    %cst_56 = arith.constant dense<0xFF800000> : vector<8xf32>
    %147 = vector.multi_reduction <maximumf>, %146, %cst_56 [1] : vector<8x8xf32> to vector<8xf32>
    %148 = vector.shape_cast %147 : vector<8xf32> to vector<8x1xf32>
    %149 = vector.broadcast %148 : vector<8x1xf32> to vector<8x8xf32>
    %150 = arith.subf %146, %149 : vector<8x8xf32>
    %151 = math.exp %150 : vector<8x8xf32>
    %cst_57 = arith.constant dense<0.000000e+00> : vector<8xf32>
    %152 = vector.multi_reduction <add>, %151, %cst_57 [1] : vector<8x8xf32> to vector<8xf32>
    %153 = vector.shape_cast %152 : vector<8xf32> to vector<8x1xf32>
    %154 = tpu.reciprocal %153 {approx = true} : vector<8x1xf32> -> vector<8x1xf32>
    %155 = vector.broadcast %154 : vector<8x1xf32> to vector<8x8xf32>
    %156 = arith.mulf %151, %155 : vector<8x8xf32>
    %cst_58 = arith.constant dense<0.000000e+00> : vector<8x8xf32>
    %157 = tpu.matmul %156, %143, %cst_58 {dimension_numbers = #tpu.dot_dimension_numbers<[1], [0], [0], [1], [0, 0, 1, 1], [], []>} : vector<8x8xf32>, vector<8x8xf32>, vector<8x8xf32> -> vector<8x8xf32>
    %c8_59 = arith.constant 8 : index
    %c16_60 = arith.constant 16 : index
    %158 = vector.load %arg15[%c8_59, %c16_60] : memref<16x32xf32, #tpu.memory_space<vmem>>, vector<8x8xf32>
    tpu.vector_store %arg15[%c8_59, %c16_60], %157 {strides = array<i32>} : memref<16x32xf32, #tpu.memory_space<vmem>>, vector<8x8xf32>,
    %159 = vector.extract_strided_slice %30 {offsets = [8, 24], sizes = [8, 8], strides = [1, 1]} : vector<16x32xf32> to vector<8x8xf32>
    %160 = vector.extract_strided_slice %31 {offsets = [8, 24], sizes = [8, 8], strides = [1, 1]} : vector<16x32xf32> to vector<8x8xf32>
    %161 = vector.extract_strided_slice %32 {offsets = [8, 24], sizes = [8, 8], strides = [1, 1]} : vector<16x32xf32> to vector<8x8xf32>
    %cst_61 = arith.constant dense<0.000000e+00> : vector<8x8xf32>
    %162 = tpu.matmul %159, %160, %cst_61 {dimension_numbers = #tpu.dot_dimension_numbers<[1], [1], [0], [0], [0, 0, 1, 0], [], []>} : vector<8x8xf32>, vector<8x8xf32>, vector<8x8xf32> -> vector<8x8xf32>
    %cst_62 = arith.constant 0.353553385 : f32
    %163 = vector.broadcast %cst_62 : f32 to vector<8x8xf32>
    %164 = arith.mulf %162, %163 : vector<8x8xf32>
    %cst_63 = arith.constant dense<0xFF800000> : vector<8xf32>
    %165 = vector.multi_reduction <maximumf>, %164, %cst_63 [1] : vector<8x8xf32> to vector<8xf32>
    %166 = vector.shape_cast %165 : vector<8xf32> to vector<8x1xf32>
    %167 = vector.broadcast %166 : vector<8x1xf32> to vector<8x8xf32>
    %168 = arith.subf %164, %167 : vector<8x8xf32>
    %169 = math.exp %168 : vector<8x8xf32>
    %cst_64 = arith.constant dense<0.000000e+00> : vector<8xf32>
    %170 = vector.multi_reduction <add>, %169, %cst_64 [1] : vector<8x8xf32> to vector<8xf32>
    %171 = vector.shape_cast %170 : vector<8xf32> to vector<8x1xf32>
    %172 = tpu.reciprocal %171 {approx = true} : vector<8x1xf32> -> vector<8x1xf32>
    %173 = vector.broadcast %172 : vector<8x1xf32> to vector<8x8xf32>
    %174 = arith.mulf %169, %173 : vector<8x8xf32>
    %cst_65 = arith.constant dense<0.000000e+00> : vector<8x8xf32>
    %175 = tpu.matmul %174, %161, %cst_65 {dimension_numbers = #tpu.dot_dimension_numbers<[1], [0], [0], [1], [0, 0, 1, 1], [], []>} : vector<8x8xf32>, vector<8x8xf32>, vector<8x8xf32> -> vector<8x8xf32>
    %c8_66 = arith.constant 8 : index
    %c24_67 = arith.constant 24 : index
    %176 = vector.load %arg15[%c8_66, %c24_67] : memref<16x32xf32, #tpu.memory_space<vmem>>, vector<8x8xf32>
    tpu.vector_store %arg15[%c8_66, %c24_67], %175 {strides = array<i32>} : memref<16x32xf32, #tpu.memory_space<vmem>>, vector<8x8xf32>,
    %c0_68 = arith.constant 0 : index
    %c0_69 = arith.constant 0 : index
    %177 = vector.load %arg15[%c0_68, %c0_69] : memref<16x32xf32, #tpu.memory_space<vmem>>, vector<16x32xf32>
    %c0_70 = arith.constant 0 : index
    %c0_71 = arith.constant 0 : index
    %178 = vector.load %arg6[%c0_70, %c0_71] : memref<32x32xf32, #tpu.memory_space<vmem>>, vector<32x32xf32>
    %cst_72 = arith.constant dense<0.000000e+00> : vector<16x32xf32>
    %179 = tpu.matmul %177, %178, %cst_72 {dimension_numbers = #tpu.dot_dimension_numbers<[1], [0], [0], [1], [0, 0, 1, 1], [], []>} : vector<16x32xf32>, vector<32x32xf32>, vector<16x32xf32> -> vector<16x32xf32>
    %c0_73 = arith.constant 0 : index
    %c0_74 = arith.constant 0 : index
    %180 = vector.load %arg7[%c0_73, %c0_74] : memref<1x32xf32, #tpu.memory_space<vmem>>, vector<1x32xf32>
    %181 = vector.broadcast %180 : vector<1x32xf32> to vector<16x32xf32>
    %182 = arith.addf %179, %181 : vector<16x32xf32>
    %183 = arith.addf %0, %182 : vector<16x32xf32>
    %cst_75 = arith.constant dense<0.000000e+00> : vector<16xf32>
    %184 = vector.multi_reduction <add>, %183, %cst_75 [1] : vector<16x32xf32> to vector<16xf32>
    %185 = vector.shape_cast %184 : vector<16xf32> to vector<16x1xf32>
    %cst_76 = arith.constant 3.200000e+01 : f32
    %186 = vector.broadcast %cst_76 : f32 to vector<16x1xf32>
    %187 = arith.divf %185, %186 : vector<16x1xf32>
    %188 = vector.broadcast %187 : vector<16x1xf32> to vector<16x32xf32>
    %189 = arith.subf %183, %188 : vector<16x32xf32>
    %190 = arith.mulf %189, %189 : vector<16x32xf32>
    %cst_77 = arith.constant dense<0.000000e+00> : vector<16xf32>
    %191 = vector.multi_reduction <add>, %190, %cst_77 [1] : vector<16x32xf32> to vector<16xf32>
    %192 = vector.shape_cast %191 : vector<16xf32> to vector<16x1xf32>
    %cst_78 = arith.constant 3.200000e+01 : f32
    %193 = vector.broadcast %cst_78 : f32 to vector<16x1xf32>
    %194 = arith.divf %192, %193 : vector<16x1xf32>
    %195 = vector.broadcast %187 : vector<16x1xf32> to vector<16x32xf32>
    %196 = arith.subf %183, %195 : vector<16x32xf32>
    %cst_79 = arith.constant 9.99999974E-6 : f32
    %197 = vector.broadcast %cst_79 : f32 to vector<16x1xf32>
    %198 = arith.addf %194, %197 : vector<16x1xf32>
    %199 = math.rsqrt %198 : vector<16x1xf32>
    %200 = vector.broadcast %199 : vector<16x1xf32> to vector<16x32xf32>
    %201 = arith.mulf %196, %200 : vector<16x32xf32>
    %c0_80 = arith.constant 0 : index
    %c0_81 = arith.constant 0 : index
    %202 = vector.load %arg8[%c0_80, %c0_81] : memref<1x32xf32, #tpu.memory_space<vmem>>, vector<1x32xf32>
    %203 = vector.broadcast %202 : vector<1x32xf32> to vector<16x32xf32>
    %204 = arith.mulf %201, %203 : vector<16x32xf32>
    %c0_82 = arith.constant 0 : index
    %c0_83 = arith.constant 0 : index
    %205 = vector.load %arg9[%c0_82, %c0_83] : memref<1x32xf32, #tpu.memory_space<vmem>>, vector<1x32xf32>
    %206 = vector.broadcast %205 : vector<1x32xf32> to vector<16x32xf32>
    %207 = arith.addf %204, %206 : vector<16x32xf32>
    %c0_84 = arith.constant 0 : index
    %c0_85 = arith.constant 0 : index
    %208 = vector.load %arg10[%c0_84, %c0_85] : memref<32x128xf32, #tpu.memory_space<vmem>>, vector<32x128xf32>
    %cst_86 = arith.constant dense<0.000000e+00> : vector<16x128xf32>
    %209 = tpu.matmul %207, %208, %cst_86 {dimension_numbers = #tpu.dot_dimension_numbers<[1], [0], [0], [1], [0, 0, 1, 1], [], []>} : vector<16x32xf32>, vector<32x128xf32>, vector<16x128xf32> -> vector<16x128xf32>
    %c0_87 = arith.constant 0 : index
    %c0_88 = arith.constant 0 : index
    %210 = vector.load %arg11[%c0_87, %c0_88] : memref<1x128xf32, #tpu.memory_space<vmem>>, vector<1x128xf32>
    %211 = vector.broadcast %210 : vector<1x128xf32> to vector<16x128xf32>
    %212 = arith.addf %209, %211 : vector<16x128xf32>
    %cst_89 = arith.constant 5.000000e-01 : f32
    %213 = vector.broadcast %cst_89 : f32 to vector<16x128xf32>
    %214 = arith.mulf %213, %212 : vector<16x128xf32>
    %cst_90 = arith.constant 0.707106769 : f32
    %215 = vector.broadcast %cst_90 : f32 to vector<16x128xf32>
    %216 = arith.mulf %212, %215 : vector<16x128xf32>
    %217 = math.erf %216 : vector<16x128xf32>
    %cst_91 = arith.constant 1.000000e+00 : f32
    %218 = vector.broadcast %cst_91 : f32 to vector<16x128xf32>
    %219 = arith.addf %218, %217 : vector<16x128xf32>
    %220 = arith.mulf %214, %219 : vector<16x128xf32>
    %c0_92 = arith.constant 0 : index
    %c0_93 = arith.constant 0 : index
    %221 = vector.load %arg12[%c0_92, %c0_93] : memref<128x32xf32, #tpu.memory_space<vmem>>, vector<128x32xf32>
    %cst_94 = arith.constant dense<0.000000e+00> : vector<16x32xf32>
    %222 = tpu.matmul %220, %221, %cst_94 {dimension_numbers = #tpu.dot_dimension_numbers<[1], [0], [0], [1], [0, 0, 1, 1], [], []>} : vector<16x128xf32>, vector<128x32xf32>, vector<16x32xf32> -> vector<16x32xf32>
    %c0_95 = arith.constant 0 : index
    %c0_96 = arith.constant 0 : index
    %223 = vector.load %arg13[%c0_95, %c0_96] : memref<1x32xf32, #tpu.memory_space<vmem>>, vector<1x32xf32>
    %224 = vector.broadcast %223 : vector<1x32xf32> to vector<16x32xf32>
    %225 = arith.addf %222, %224 : vector<16x32xf32>
    %226 = arith.addf %183, %225 : vector<16x32xf32>
    %c0_97 = arith.constant 0 : index
    %c0_98 = arith.constant 0 : index
    %227 = vector.load %arg14[%c0_97, %c0_98] : memref<16x32xf32, #tpu.memory_space<vmem>>, vector<16x32xf32>
    tpu.vector_store %arg14[%c0_97, %c0_98], %226 {strides = array<i32>} : memref<16x32xf32, #tpu.memory_space<vmem>>, vector<16x32xf32>,
    return
  }
  func.func @transform_0(%arg0: i32) -> (i32, i32) {
    %c0_i32 = arith.constant 0 : i32
    %c0_i32_0 = arith.constant 0 : i32
    return %arg0, %c0_i32 : i32, i32
  }
  func.func @transform_1(%arg0: i32) -> (i32, i32) {
    %c0_i32 = arith.constant 0 : i32
    %c0_i32_0 = arith.constant 0 : i32
    return %arg0, %c0_i32 : i32, i32
  }
  func.func @transform_2(%arg0: i32) -> (i32, i32) {
    %c0_i32 = arith.constant 0 : i32
    %c0_i32_0 = arith.constant 0 : i32
    return %arg0, %c0_i32 : i32, i32
  }
  func.func @transform_3(%arg0: i32) -> (i32, i32) {
    %c0_i32 = arith.constant 0 : i32
    %c0_i32_0 = arith.constant 0 : i32
    %c0_i32_1 = arith.constant 0 : i32
    return %c0_i32, %c0_i32_0 : i32, i32
  }
  func.func @transform_4(%arg0: i32) -> (i32, i32) {
    %c0_i32 = arith.constant 0 : i32
    %c0_i32_0 = arith.constant 0 : i32
    %c0_i32_1 = arith.constant 0 : i32
    return %c0_i32, %c0_i32_0 : i32, i32
  }
  func.func @transform_5(%arg0: i32) -> (i32, i32) {
    %c0_i32 = arith.constant 0 : i32
    %c0_i32_0 = arith.constant 0 : i32
    %c0_i32_1 = arith.constant 0 : i32
    return %c0_i32, %c0_i32_0 : i32, i32
  }
  func.func @transform_6(%arg0: i32) -> (i32, i32) {
    %c0_i32 = arith.constant 0 : i32
    %c0_i32_0 = arith.constant 0 : i32
    %c0_i32_1 = arith.constant 0 : i32
    return %c0_i32, %c0_i32_0 : i32, i32
  }
  func.func @transform_7(%arg0: i32) -> (i32, i32) {
    %c0_i32 = arith.constant 0 : i32
    %c0_i32_0 = arith.constant 0 : i32
    %c0_i32_1 = arith.constant 0 : i32
    return %c0_i32, %c0_i32_0 : i32, i32
  }
  func.func @transform_8(%arg0: i32) -> (i32, i32) {
    %c0_i32 = arith.constant 0 : i32
    %c0_i32_0 = arith.constant 0 : i32
    %c0_i32_1 = arith.constant 0 : i32
    return %c0_i32, %c0_i32_0 : i32, i32
  }
  func.func @transform_9(%arg0: i32) -> (i32, i32) {
    %c0_i32 = arith.constant 0 : i32
    %c0_i32_0 = arith.constant 0 : i32
    %c0_i32_1 = arith.constant 0 : i32
    return %c0_i32, %c0_i32_0 : i32, i32
  }
  func.func @transform_10(%arg0: i32) -> (i32, i32) {
    %c0_i32 = arith.constant 0 : i32
    %c0_i32_0 = arith.constant 0 : i32
    %c0_i32_1 = arith.constant 0 : i32
    return %c0_i32, %c0_i32_0 : i32, i32
  }
  func.func @transform_11(%arg0: i32) -> (i32, i32) {
    %c0_i32 = arith.constant 0 : i32
    %c0_i32_0 = arith.constant 0 : i32
    %c0_i32_1 = arith.constant 0 : i32
    return %c0_i32, %c0_i32_0 : i32, i32
  }
  func.func @transform_12(%arg0: i32) -> (i32, i32) {
    %c0_i32 = arith.constant 0 : i32
    %c0_i32_0 = arith.constant 0 : i32
    %c0_i32_1 = arith.constant 0 : i32
    return %c0_i32, %c0_i32_0 : i32, i32
  }
  func.func @transform_13(%arg0: i32) -> (i32, i32) {
    %c0_i32 = arith.constant 0 : i32
    %c0_i32_0 = arith.constant 0 : i32
    return %arg0, %c0_i32 : i32, i32
  }
}

module attributes {stable_mosaic.version = 11 : i64} {
  func.func @_encoder_block_kernel(%arg0: i32, %arg1: memref<16x32xf32, #tpu.memory_space<vmem>>, %arg2: memref<16x32xf32, #tpu.memory_space<vmem>>, %arg3: memref<16x32xf32, #tpu.memory_space<vmem>>, %arg4: memref<32x96xf32, #tpu.memory_space<vmem>>, %arg5: memref<1x96xf32, #tpu.memory_space<vmem>>, %arg6: memref<32x32xf32, #tpu.memory_space<vmem>>, %arg7: memref<1x32xf32, #tpu.memory_space<vmem>>, %arg8: memref<1x32xf32, #tpu.memory_space<vmem>>, %arg9: memref<1x32xf32, #tpu.memory_space<vmem>>, %arg10: memref<32x128xf32, #tpu.memory_space<vmem>>, %arg11: memref<1x128xf32, #tpu.memory_space<vmem>>, %arg12: memref<128x32xf32, #tpu.memory_space<vmem>>, %arg13: memref<1x32xf32, #tpu.memory_space<vmem>>, %arg14: memref<16x32xf32, #tpu.memory_space<vmem>>, %arg15: memref<16x32xf32, #tpu.memory_space<vmem>>) attributes {dimension_semantics = [#tpu.dimension_semantics<parallel>], iteration_bounds = array<i64: 1>, scalar_prefetch = 0 : i64, scratch_operands = 1 : i64, tpu.core_type = #tpu.core_type<tc>, window_params = [{transform_indices = @transform_0, window_bounds = array<i64: 16, 32>}, {transform_indices = @transform_1, window_bounds = array<i64: 16, 32>}, {transform_indices = @transform_2, window_bounds = array<i64: 16, 32>}, {pipeline_mode = #tpu.pipeline_mode<synchronous>, transform_indices = @transform_3, window_bounds = array<i64: 32, 96>}, {pipeline_mode = #tpu.pipeline_mode<synchronous>, transform_indices = @transform_4, window_bounds = array<i64: 1, 96>}, {pipeline_mode = #tpu.pipeline_mode<synchronous>, transform_indices = @transform_5, window_bounds = array<i64: 32, 32>}, {pipeline_mode = #tpu.pipeline_mode<synchronous>, transform_indices = @transform_6, window_bounds = array<i64: 1, 32>}, {pipeline_mode = #tpu.pipeline_mode<synchronous>, transform_indices = @transform_7, window_bounds = array<i64: 1, 32>}, {pipeline_mode = #tpu.pipeline_mode<synchronous>, transform_indices = @transform_8, window_bounds = array<i64: 1, 32>}, {pipeline_mode = #tpu.pipeline_mode<synchronous>, transform_indices = @transform_9, window_bounds = array<i64: 32, 128>}, {pipeline_mode = #tpu.pipeline_mode<synchronous>, transform_indices = @transform_10, window_bounds = array<i64: 1, 128>}, {pipeline_mode = #tpu.pipeline_mode<synchronous>, transform_indices = @transform_11, window_bounds = array<i64: 128, 32>}, {pipeline_mode = #tpu.pipeline_mode<synchronous>, transform_indices = @transform_12, window_bounds = array<i64: 1, 32>}, {transform_indices = @transform_13, window_bounds = array<i64: 16, 32>}]} {
    %c0 = arith.constant 0 : index
    %c0_0 = arith.constant 0 : index
    %0 = vector.load %arg1[%c0, %c0_0] : memref<16x32xf32, #tpu.memory_space<vmem>>, vector<16x32xf32>
    %cst = arith.constant dense<0.000000e+00> : vector<16xf32>
    %1 = vector.multi_reduction <add>, %0, %cst [1] : vector<16x32xf32> to vector<16xf32>
    %2 = vector.shape_cast %1 : vector<16xf32> to vector<16x1xf32>
    %cst_1 = arith.constant 3.200000e+01 : f32
    %3 = vector.broadcast %cst_1 : f32 to vector<16x1xf32>
    %4 = arith.divf %2, %3 : vector<16x1xf32>
    %5 = vector.broadcast %4 : vector<16x1xf32> to vector<16x32xf32>
    %6 = arith.subf %0, %5 : vector<16x32xf32>
    %7 = arith.mulf %6, %6 : vector<16x32xf32>
    %cst_2 = arith.constant dense<0.000000e+00> : vector<16xf32>
    %8 = vector.multi_reduction <add>, %7, %cst_2 [1] : vector<16x32xf32> to vector<16xf32>
    %9 = vector.shape_cast %8 : vector<16xf32> to vector<16x1xf32>
    %cst_3 = arith.constant 3.200000e+01 : f32
    %10 = vector.broadcast %cst_3 : f32 to vector<16x1xf32>
    %11 = arith.divf %9, %10 : vector<16x1xf32>
    %12 = vector.broadcast %4 : vector<16x1xf32> to vector<16x32xf32>
    %13 = arith.subf %0, %12 : vector<16x32xf32>
    %cst_4 = arith.constant 9.99999974E-6 : f32
    %14 = vector.broadcast %cst_4 : f32 to vector<16x1xf32>
    %15 = arith.addf %11, %14 : vector<16x1xf32>
    %16 = math.rsqrt %15 : vector<16x1xf32>
    %17 = vector.broadcast %16 : vector<16x1xf32> to vector<16x32xf32>
    %18 = arith.mulf %13, %17 : vector<16x32xf32>
    %c0_5 = arith.constant 0 : index
    %c0_6 = arith.constant 0 : index
    %19 = vector.load %arg2[%c0_5, %c0_6] : memref<16x32xf32, #tpu.memory_space<vmem>>, vector<16x32xf32>
    %cst_7 = arith.constant 1.000000e+00 : f32
    %20 = vector.broadcast %cst_7 : f32 to vector<16x32xf32>
    %21 = arith.addf %20, %19 : vector<16x32xf32>
    %22 = arith.mulf %18, %21 : vector<16x32xf32>
    %c0_8 = arith.constant 0 : index
    %c0_9 = arith.constant 0 : index
    %23 = vector.load %arg3[%c0_8, %c0_9] : memref<16x32xf32, #tpu.memory_space<vmem>>, vector<16x32xf32>
    %24 = arith.addf %22, %23 : vector<16x32xf32>
    %c0_10 = arith.constant 0 : index
    %c0_11 = arith.constant 0 : index
    %25 = vector.load %arg4[%c0_10, %c0_11] : memref<32x96xf32, #tpu.memory_space<vmem>>, vector<32x96xf32>
    %cst_12 = arith.constant dense<0.000000e+00> : vector<16x96xf32>
    %26 = tpu.matmul %24, %25, %cst_12 {dimension_numbers = #tpu.dot_dimension_numbers<[1], [0], [0], [1], [0, 0, 1, 1], [], []>} : vector<16x32xf32>, vector<32x96xf32>, vector<16x96xf32> -> vector<16x96xf32>
    %c0_13 = arith.constant 0 : index
    %c0_14 = arith.constant 0 : index
    %27 = vector.load %arg5[%c0_13, %c0_14] : memref<1x96xf32, #tpu.memory_space<vmem>>, vector<1x96xf32>
    %28 = vector.broadcast %27 : vector<1x96xf32> to vector<16x96xf32>
    %29 = arith.addf %26, %28 : vector<16x96xf32>
    %30 = vector.extract_strided_slice %29 {offsets = [0, 0], sizes = [16, 32], strides = [1, 1]} : vector<16x96xf32> to vector<16x32xf32>
    %31 = vector.extract_strided_slice %29 {offsets = [0, 32], sizes = [16, 32], strides = [1, 1]} : vector<16x96xf32> to vector<16x32xf32>
    %32 = vector.extract_strided_slice %29 {offsets = [0, 64], sizes = [16, 32], strides = [1, 1]} : vector<16x96xf32> to vector<16x32xf32>
    %33 = vector.extract_strided_slice %30 {offsets = [0, 0], sizes = [8, 8], strides = [1, 1]} : vector<16x32xf32> to vector<8x8xf32>
    %34 = vector.extract_strided_slice %31 {offsets = [0, 0], sizes = [8, 8], strides = [1, 1]} : vector<16x32xf32> to vector<8x8xf32>
    %35 = vector.extract_strided_slice %32 {offsets = [0, 0], sizes = [8, 8], strides = [1, 1]} : vector<16x32xf32> to vector<8x8xf32>
    %cst_15 = arith.constant dense<0.000000e+00> : vector<8x8xf32>
    %36 = tpu.matmul %33, %34, %cst_15 {dimension_numbers = #tpu.dot_dimension_numbers<[1], [1], [0], [0], [0, 0, 1, 0], [], []>} : vector<8x8xf32>, vector<8x8xf32>, vector<8x8xf32> -> vector<8x8xf32>
    %cst_16 = arith.constant 0.353553385 : f32
    %37 = vector.broadcast %cst_16 : f32 to vector<8x8xf32>
    %38 = arith.mulf %36, %37 : vector<8x8xf32>
    %cst_17 = arith.constant dense<0xFF800000> : vector<8xf32>
    %39 = vector.multi_reduction <maximumf>, %38, %cst_17 [1] : vector<8x8xf32> to vector<8xf32>
    %40 = vector.shape_cast %39 : vector<8xf32> to vector<8x1xf32>
    %41 = vector.broadcast %40 : vector<8x1xf32> to vector<8x8xf32>
    %42 = arith.subf %38, %41 : vector<8x8xf32>
    %43 = math.exp %42 : vector<8x8xf32>
    %cst_18 = arith.constant dense<0.000000e+00> : vector<8xf32>
    %44 = vector.multi_reduction <add>, %43, %cst_18 [1] : vector<8x8xf32> to vector<8xf32>
    %45 = vector.shape_cast %44 : vector<8xf32> to vector<8x1xf32>
    %46 = tpu.reciprocal %45 {approx = true} : vector<8x1xf32> -> vector<8x1xf32>
    %47 = vector.broadcast %46 : vector<8x1xf32> to vector<8x8xf32>
    %48 = arith.mulf %43, %47 : vector<8x8xf32>
    %cst_19 = arith.constant dense<0.000000e+00> : vector<8x8xf32>
    %49 = tpu.matmul %48, %35, %cst_19 {dimension_numbers = #tpu.dot_dimension_numbers<[1], [0], [0], [1], [0, 0, 1, 1], [], []>} : vector<8x8xf32>, vector<8x8xf32>, vector<8x8xf32> -> vector<8x8xf32>
    %c0_20 = arith.constant 0 : index
    %c0_21 = arith.constant 0 : index
    %50 = vector.load %arg15[%c0_20, %c0_21] : memref<16x32xf32, #tpu.memory_space<vmem>>, vector<8x8xf32>
    tpu.vector_store %arg15[%c0_20, %c0_21], %49 {strides = array<i32>} : memref<16x32xf32, #tpu.memory_space<vmem>>, vector<8x8xf32>,
    %51 = vector.extract_strided_slice %30 {offsets = [0, 8], sizes = [8, 8], strides = [1, 1]} : vector<16x32xf32> to vector<8x8xf32>
    %52 = vector.extract_strided_slice %31 {offsets = [0, 8], sizes = [8, 8], strides = [1, 1]} : vector<16x32xf32> to vector<8x8xf32>
    %53 = vector.extract_strided_slice %32 {offsets = [0, 8], sizes = [8, 8], strides = [1, 1]} : vector<16x32xf32> to vector<8x8xf32>
    %cst_22 = arith.constant dense<0.000000e+00> : vector<8x8xf32>
    %54 = tpu.matmul %51, %52, %cst_22 {dimension_numbers = #tpu.dot_dimension_numbers<[1], [1], [0], [0], [0, 0, 1, 0], [], []>} : vector<8x8xf32>, vector<8x8xf32>, vector<8x8xf32> -> vector<8x8xf32>
    %cst_23 = arith.constant 0.353553385 : f32
    %55 = vector.broadcast %cst_23 : f32 to vector<8x8xf32>
    %56 = arith.mulf %54, %55 : vector<8x8xf32>
    %cst_24 = arith.constant dense<0xFF800000> : vector<8xf32>
    %57 = vector.multi_reduction <maximumf>, %56, %cst_24 [1] : vector<8x8xf32> to vector<8xf32>
    %58 = vector.shape_cast %57 : vector<8xf32> to vector<8x1xf32>
    %59 = vector.broadcast %58 : vector<8x1xf32> to vector<8x8xf32>
    %60 = arith.subf %56, %59 : vector<8x8xf32>
    %61 = math.exp %60 : vector<8x8xf32>
    %cst_25 = arith.constant dense<0.000000e+00> : vector<8xf32>
    %62 = vector.multi_reduction <add>, %61, %cst_25 [1] : vector<8x8xf32> to vector<8xf32>
    %63 = vector.shape_cast %62 : vector<8xf32> to vector<8x1xf32>
    %64 = tpu.reciprocal %63 {approx = true} : vector<8x1xf32> -> vector<8x1xf32>
    %65 = vector.broadcast %64 : vector<8x1xf32> to vector<8x8xf32>
    %66 = arith.mulf %61, %65 : vector<8x8xf32>
    %cst_26 = arith.constant dense<0.000000e+00> : vector<8x8xf32>
    %67 = tpu.matmul %66, %53, %cst_26 {dimension_numbers = #tpu.dot_dimension_numbers<[1], [0], [0], [1], [0, 0, 1, 1], [], []>} : vector<8x8xf32>, vector<8x8xf32>, vector<8x8xf32> -> vector<8x8xf32>
    %c0_27 = arith.constant 0 : index
    %c8 = arith.constant 8 : index
    %68 = vector.load %arg15[%c0_27, %c8] : memref<16x32xf32, #tpu.memory_space<vmem>>, vector<8x8xf32>
    tpu.vector_store %arg15[%c0_27, %c8], %67 {strides = array<i32>} : memref<16x32xf32, #tpu.memory_space<vmem>>, vector<8x8xf32>,
    %69 = vector.extract_strided_slice %30 {offsets = [0, 16], sizes = [8, 8], strides = [1, 1]} : vector<16x32xf32> to vector<8x8xf32>
    %70 = vector.extract_strided_slice %31 {offsets = [0, 16], sizes = [8, 8], strides = [1, 1]} : vector<16x32xf32> to vector<8x8xf32>
    %71 = vector.extract_strided_slice %32 {offsets = [0, 16], sizes = [8, 8], strides = [1, 1]} : vector<16x32xf32> to vector<8x8xf32>
    %cst_28 = arith.constant dense<0.000000e+00> : vector<8x8xf32>
    %72 = tpu.matmul %69, %70, %cst_28 {dimension_numbers = #tpu.dot_dimension_numbers<[1], [1], [0], [0], [0, 0, 1, 0], [], []>} : vector<8x8xf32>, vector<8x8xf32>, vector<8x8xf32> -> vector<8x8xf32>
    %cst_29 = arith.constant 0.353553385 : f32
    %73 = vector.broadcast %cst_29 : f32 to vector<8x8xf32>
    %74 = arith.mulf %72, %73 : vector<8x8xf32>
    %cst_30 = arith.constant dense<0xFF800000> : vector<8xf32>
    %75 = vector.multi_reduction <maximumf>, %74, %cst_30 [1] : vector<8x8xf32> to vector<8xf32>
    %76 = vector.shape_cast %75 : vector<8xf32> to vector<8x1xf32>
    %77 = vector.broadcast %76 : vector<8x1xf32> to vector<8x8xf32>
    %78 = arith.subf %74, %77 : vector<8x8xf32>
    %79 = math.exp %78 : vector<8x8xf32>
    %cst_31 = arith.constant dense<0.000000e+00> : vector<8xf32>
    %80 = vector.multi_reduction <add>, %79, %cst_31 [1] : vector<8x8xf32> to vector<8xf32>
    %81 = vector.shape_cast %80 : vector<8xf32> to vector<8x1xf32>
    %82 = tpu.reciprocal %81 {approx = true} : vector<8x1xf32> -> vector<8x1xf32>
    %83 = vector.broadcast %82 : vector<8x1xf32> to vector<8x8xf32>
    %84 = arith.mulf %79, %83 : vector<8x8xf32>
    %cst_32 = arith.constant dense<0.000000e+00> : vector<8x8xf32>
    %85 = tpu.matmul %84, %71, %cst_32 {dimension_numbers = #tpu.dot_dimension_numbers<[1], [0], [0], [1], [0, 0, 1, 1], [], []>} : vector<8x8xf32>, vector<8x8xf32>, vector<8x8xf32> -> vector<8x8xf32>
    %c0_33 = arith.constant 0 : index
    %c16 = arith.constant 16 : index
    %86 = vector.load %arg15[%c0_33, %c16] : memref<16x32xf32, #tpu.memory_space<vmem>>, vector<8x8xf32>
    tpu.vector_store %arg15[%c0_33, %c16], %85 {strides = array<i32>} : memref<16x32xf32, #tpu.memory_space<vmem>>, vector<8x8xf32>,
    %87 = vector.extract_strided_slice %30 {offsets = [0, 24], sizes = [8, 8], strides = [1, 1]} : vector<16x32xf32> to vector<8x8xf32>
    %88 = vector.extract_strided_slice %31 {offsets = [0, 24], sizes = [8, 8], strides = [1, 1]} : vector<16x32xf32> to vector<8x8xf32>
    %89 = vector.extract_strided_slice %32 {offsets = [0, 24], sizes = [8, 8], strides = [1, 1]} : vector<16x32xf32> to vector<8x8xf32>
    %cst_34 = arith.constant dense<0.000000e+00> : vector<8x8xf32>
    %90 = tpu.matmul %87, %88, %cst_34 {dimension_numbers = #tpu.dot_dimension_numbers<[1], [1], [0], [0], [0, 0, 1, 0], [], []>} : vector<8x8xf32>, vector<8x8xf32>, vector<8x8xf32> -> vector<8x8xf32>
    %cst_35 = arith.constant 0.353553385 : f32
    %91 = vector.broadcast %cst_35 : f32 to vector<8x8xf32>
    %92 = arith.mulf %90, %91 : vector<8x8xf32>
    %cst_36 = arith.constant dense<0xFF800000> : vector<8xf32>
    %93 = vector.multi_reduction <maximumf>, %92, %cst_36 [1] : vector<8x8xf32> to vector<8xf32>
    %94 = vector.shape_cast %93 : vector<8xf32> to vector<8x1xf32>
    %95 = vector.broadcast %94 : vector<8x1xf32> to vector<8x8xf32>
    %96 = arith.subf %92, %95 : vector<8x8xf32>
    %97 = math.exp %96 : vector<8x8xf32>
    %cst_37 = arith.constant dense<0.000000e+00> : vector<8xf32>
    %98 = vector.multi_reduction <add>, %97, %cst_37 [1] : vector<8x8xf32> to vector<8xf32>
    %99 = vector.shape_cast %98 : vector<8xf32> to vector<8x1xf32>
    %100 = tpu.reciprocal %99 {approx = true} : vector<8x1xf32> -> vector<8x1xf32>
    %101 = vector.broadcast %100 : vector<8x1xf32> to vector<8x8xf32>
    %102 = arith.mulf %97, %101 : vector<8x8xf32>
    %cst_38 = arith.constant dense<0.000000e+00> : vector<8x8xf32>
    %103 = tpu.matmul %102, %89, %cst_38 {dimension_numbers = #tpu.dot_dimension_numbers<[1], [0], [0], [1], [0, 0, 1, 1], [], []>} : vector<8x8xf32>, vector<8x8xf32>, vector<8x8xf32> -> vector<8x8xf32>
    %c0_39 = arith.constant 0 : index
    %c24 = arith.constant 24 : index
    %104 = vector.load %arg15[%c0_39, %c24] : memref<16x32xf32, #tpu.memory_space<vmem>>, vector<8x8xf32>
    tpu.vector_store %arg15[%c0_39, %c24], %103 {strides = array<i32>} : memref<16x32xf32, #tpu.memory_space<vmem>>, vector<8x8xf32>,
    %105 = vector.extract_strided_slice %30 {offsets = [8, 0], sizes = [8, 8], strides = [1, 1]} : vector<16x32xf32> to vector<8x8xf32>
    %106 = vector.extract_strided_slice %31 {offsets = [8, 0], sizes = [8, 8], strides = [1, 1]} : vector<16x32xf32> to vector<8x8xf32>
    %107 = vector.extract_strided_slice %32 {offsets = [8, 0], sizes = [8, 8], strides = [1, 1]} : vector<16x32xf32> to vector<8x8xf32>
    %cst_40 = arith.constant dense<0.000000e+00> : vector<8x8xf32>
    %108 = tpu.matmul %105, %106, %cst_40 {dimension_numbers = #tpu.dot_dimension_numbers<[1], [1], [0], [0], [0, 0, 1, 0], [], []>} : vector<8x8xf32>, vector<8x8xf32>, vector<8x8xf32> -> vector<8x8xf32>
    %cst_41 = arith.constant 0.353553385 : f32
    %109 = vector.broadcast %cst_41 : f32 to vector<8x8xf32>
    %110 = arith.mulf %108, %109 : vector<8x8xf32>
    %cst_42 = arith.constant dense<0xFF800000> : vector<8xf32>
    %111 = vector.multi_reduction <maximumf>, %110, %cst_42 [1] : vector<8x8xf32> to vector<8xf32>
    %112 = vector.shape_cast %111 : vector<8xf32> to vector<8x1xf32>
    %113 = vector.broadcast %112 : vector<8x1xf32> to vector<8x8xf32>
    %114 = arith.subf %110, %113 : vector<8x8xf32>
    %115 = math.exp %114 : vector<8x8xf32>
    %cst_43 = arith.constant dense<0.000000e+00> : vector<8xf32>
    %116 = vector.multi_reduction <add>, %115, %cst_43 [1] : vector<8x8xf32> to vector<8xf32>
    %117 = vector.shape_cast %116 : vector<8xf32> to vector<8x1xf32>
    %118 = tpu.reciprocal %117 {approx = true} : vector<8x1xf32> -> vector<8x1xf32>
    %119 = vector.broadcast %118 : vector<8x1xf32> to vector<8x8xf32>
    %120 = arith.mulf %115, %119 : vector<8x8xf32>
    %cst_44 = arith.constant dense<0.000000e+00> : vector<8x8xf32>
    %121 = tpu.matmul %120, %107, %cst_44 {dimension_numbers = #tpu.dot_dimension_numbers<[1], [0], [0], [1], [0, 0, 1, 1], [], []>} : vector<8x8xf32>, vector<8x8xf32>, vector<8x8xf32> -> vector<8x8xf32>
    %c8_45 = arith.constant 8 : index
    %c0_46 = arith.constant 0 : index
    %122 = vector.load %arg15[%c8_45, %c0_46] : memref<16x32xf32, #tpu.memory_space<vmem>>, vector<8x8xf32>
    tpu.vector_store %arg15[%c8_45, %c0_46], %121 {strides = array<i32>} : memref<16x32xf32, #tpu.memory_space<vmem>>, vector<8x8xf32>,
    %123 = vector.extract_strided_slice %30 {offsets = [8, 8], sizes = [8, 8], strides = [1, 1]} : vector<16x32xf32> to vector<8x8xf32>
    %124 = vector.extract_strided_slice %31 {offsets = [8, 8], sizes = [8, 8], strides = [1, 1]} : vector<16x32xf32> to vector<8x8xf32>
    %125 = vector.extract_strided_slice %32 {offsets = [8, 8], sizes = [8, 8], strides = [1, 1]} : vector<16x32xf32> to vector<8x8xf32>
    %cst_47 = arith.constant dense<0.000000e+00> : vector<8x8xf32>
    %126 = tpu.matmul %123, %124, %cst_47 {dimension_numbers = #tpu.dot_dimension_numbers<[1], [1], [0], [0], [0, 0, 1, 0], [], []>} : vector<8x8xf32>, vector<8x8xf32>, vector<8x8xf32> -> vector<8x8xf32>
    %cst_48 = arith.constant 0.353553385 : f32
    %127 = vector.broadcast %cst_48 : f32 to vector<8x8xf32>
    %128 = arith.mulf %126, %127 : vector<8x8xf32>
    %cst_49 = arith.constant dense<0xFF800000> : vector<8xf32>
    %129 = vector.multi_reduction <maximumf>, %128, %cst_49 [1] : vector<8x8xf32> to vector<8xf32>
    %130 = vector.shape_cast %129 : vector<8xf32> to vector<8x1xf32>
    %131 = vector.broadcast %130 : vector<8x1xf32> to vector<8x8xf32>
    %132 = arith.subf %128, %131 : vector<8x8xf32>
    %133 = math.exp %132 : vector<8x8xf32>
    %cst_50 = arith.constant dense<0.000000e+00> : vector<8xf32>
    %134 = vector.multi_reduction <add>, %133, %cst_50 [1] : vector<8x8xf32> to vector<8xf32>
    %135 = vector.shape_cast %134 : vector<8xf32> to vector<8x1xf32>
    %136 = tpu.reciprocal %135 {approx = true} : vector<8x1xf32> -> vector<8x1xf32>
    %137 = vector.broadcast %136 : vector<8x1xf32> to vector<8x8xf32>
    %138 = arith.mulf %133, %137 : vector<8x8xf32>
    %cst_51 = arith.constant dense<0.000000e+00> : vector<8x8xf32>
    %139 = tpu.matmul %138, %125, %cst_51 {dimension_numbers = #tpu.dot_dimension_numbers<[1], [0], [0], [1], [0, 0, 1, 1], [], []>} : vector<8x8xf32>, vector<8x8xf32>, vector<8x8xf32> -> vector<8x8xf32>
    %c8_52 = arith.constant 8 : index
    %c8_53 = arith.constant 8 : index
    %140 = vector.load %arg15[%c8_52, %c8_53] : memref<16x32xf32, #tpu.memory_space<vmem>>, vector<8x8xf32>
    tpu.vector_store %arg15[%c8_52, %c8_53], %139 {strides = array<i32>} : memref<16x32xf32, #tpu.memory_space<vmem>>, vector<8x8xf32>,
    %141 = vector.extract_strided_slice %30 {offsets = [8, 16], sizes = [8, 8], strides = [1, 1]} : vector<16x32xf32> to vector<8x8xf32>
    %142 = vector.extract_strided_slice %31 {offsets = [8, 16], sizes = [8, 8], strides = [1, 1]} : vector<16x32xf32> to vector<8x8xf32>
    %143 = vector.extract_strided_slice %32 {offsets = [8, 16], sizes = [8, 8], strides = [1, 1]} : vector<16x32xf32> to vector<8x8xf32>
    %cst_54 = arith.constant dense<0.000000e+00> : vector<8x8xf32>
    %144 = tpu.matmul %141, %142, %cst_54 {dimension_numbers = #tpu.dot_dimension_numbers<[1], [1], [0], [0], [0, 0, 1, 0], [], []>} : vector<8x8xf32>, vector<8x8xf32>, vector<8x8xf32> -> vector<8x8xf32>
    %cst_55 = arith.constant 0.353553385 : f32
    %145 = vector.broadcast %cst_55 : f32 to vector<8x8xf32>
    %146 = arith.mulf %144, %145 : vector<8x8xf32>
    %cst_56 = arith.constant dense<0xFF800000> : vector<8xf32>
    %147 = vector.multi_reduction <maximumf>, %146, %cst_56 [1] : vector<8x8xf32> to vector<8xf32>
    %148 = vector.shape_cast %147 : vector<8xf32> to vector<8x1xf32>
    %149 = vector.broadcast %148 : vector<8x1xf32> to vector<8x8xf32>
    %150 = arith.subf %146, %149 : vector<8x8xf32>
    %151 = math.exp %150 : vector<8x8xf32>
    %cst_57 = arith.constant dense<0.000000e+00> : vector<8xf32>
    %152 = vector.multi_reduction <add>, %151, %cst_57 [1] : vector<8x8xf32> to vector<8xf32>
    %153 = vector.shape_cast %152 : vector<8xf32> to vector<8x1xf32>
    %154 = tpu.reciprocal %153 {approx = true} : vector<8x1xf32> -> vector<8x1xf32>
    %155 = vector.broadcast %154 : vector<8x1xf32> to vector<8x8xf32>
    %156 = arith.mulf %151, %155 : vector<8x8xf32>
    %cst_58 = arith.constant dense<0.000000e+00> : vector<8x8xf32>
    %157 = tpu.matmul %156, %143, %cst_58 {dimension_numbers = #tpu.dot_dimension_numbers<[1], [0], [0], [1], [0, 0, 1, 1], [], []>} : vector<8x8xf32>, vector<8x8xf32>, vector<8x8xf32> -> vector<8x8xf32>
    %c8_59 = arith.constant 8 : index
    %c16_60 = arith.constant 16 : index
    %158 = vector.load %arg15[%c8_59, %c16_60] : memref<16x32xf32, #tpu.memory_space<vmem>>, vector<8x8xf32>
    tpu.vector_store %arg15[%c8_59, %c16_60], %157 {strides = array<i32>} : memref<16x32xf32, #tpu.memory_space<vmem>>, vector<8x8xf32>,
    %159 = vector.extract_strided_slice %30 {offsets = [8, 24], sizes = [8, 8], strides = [1, 1]} : vector<16x32xf32> to vector<8x8xf32>
    %160 = vector.extract_strided_slice %31 {offsets = [8, 24], sizes = [8, 8], strides = [1, 1]} : vector<16x32xf32> to vector<8x8xf32>
    %161 = vector.extract_strided_slice %32 {offsets = [8, 24], sizes = [8, 8], strides = [1, 1]} : vector<16x32xf32> to vector<8x8xf32>
    %cst_61 = arith.constant dense<0.000000e+00> : vector<8x8xf32>
    %162 = tpu.matmul %159, %160, %cst_61 {dimension_numbers = #tpu.dot_dimension_numbers<[1], [1], [0], [0], [0, 0, 1, 0], [], []>} : vector<8x8xf32>, vector<8x8xf32>, vector<8x8xf32> -> vector<8x8xf32>
    %cst_62 = arith.constant 0.353553385 : f32
    %163 = vector.broadcast %cst_62 : f32 to vector<8x8xf32>
    %164 = arith.mulf %162, %163 : vector<8x8xf32>
    %cst_63 = arith.constant dense<0xFF800000> : vector<8xf32>
    %165 = vector.multi_reduction <maximumf>, %164, %cst_63 [1] : vector<8x8xf32> to vector<8xf32>
    %166 = vector.shape_cast %165 : vector<8xf32> to vector<8x1xf32>
    %167 = vector.broadcast %166 : vector<8x1xf32> to vector<8x8xf32>
    %168 = arith.subf %164, %167 : vector<8x8xf32>
    %169 = math.exp %168 : vector<8x8xf32>
    %cst_64 = arith.constant dense<0.000000e+00> : vector<8xf32>
    %170 = vector.multi_reduction <add>, %169, %cst_64 [1] : vector<8x8xf32> to vector<8xf32>
    %171 = vector.shape_cast %170 : vector<8xf32> to vector<8x1xf32>
    %172 = tpu.reciprocal %171 {approx = true} : vector<8x1xf32> -> vector<8x1xf32>
    %173 = vector.broadcast %172 : vector<8x1xf32> to vector<8x8xf32>
    %174 = arith.mulf %169, %173 : vector<8x8xf32>
    %cst_65 = arith.constant dense<0.000000e+00> : vector<8x8xf32>
    %175 = tpu.matmul %174, %161, %cst_65 {dimension_numbers = #tpu.dot_dimension_numbers<[1], [0], [0], [1], [0, 0, 1, 1], [], []>} : vector<8x8xf32>, vector<8x8xf32>, vector<8x8xf32> -> vector<8x8xf32>
    %c8_66 = arith.constant 8 : index
    %c24_67 = arith.constant 24 : index
    %176 = vector.load %arg15[%c8_66, %c24_67] : memref<16x32xf32, #tpu.memory_space<vmem>>, vector<8x8xf32>
    tpu.vector_store %arg15[%c8_66, %c24_67], %175 {strides = array<i32>} : memref<16x32xf32, #tpu.memory_space<vmem>>, vector<8x8xf32>,
    %c0_68 = arith.constant 0 : index
    %c0_69 = arith.constant 0 : index
    %177 = vector.load %arg15[%c0_68, %c0_69] : memref<16x32xf32, #tpu.memory_space<vmem>>, vector<16x32xf32>
    %c0_70 = arith.constant 0 : index
    %c0_71 = arith.constant 0 : index
    %178 = vector.load %arg6[%c0_70, %c0_71] : memref<32x32xf32, #tpu.memory_space<vmem>>, vector<32x32xf32>
    %cst_72 = arith.constant dense<0.000000e+00> : vector<16x32xf32>
    %179 = tpu.matmul %177, %178, %cst_72 {dimension_numbers = #tpu.dot_dimension_numbers<[1], [0], [0], [1], [0, 0, 1, 1], [], []>} : vector<16x32xf32>, vector<32x32xf32>, vector<16x32xf32> -> vector<16x32xf32>
    %c0_73 = arith.constant 0 : index
    %c0_74 = arith.constant 0 : index
    %180 = vector.load %arg7[%c0_73, %c0_74] : memref<1x32xf32, #tpu.memory_space<vmem>>, vector<1x32xf32>
    %181 = vector.broadcast %180 : vector<1x32xf32> to vector<16x32xf32>
    %182 = arith.addf %179, %181 : vector<16x32xf32>
    %183 = arith.addf %0, %182 : vector<16x32xf32>
    %cst_75 = arith.constant dense<0.000000e+00> : vector<16xf32>
    %184 = vector.multi_reduction <add>, %183, %cst_75 [1] : vector<16x32xf32> to vector<16xf32>
    %185 = vector.shape_cast %184 : vector<16xf32> to vector<16x1xf32>
    %cst_76 = arith.constant 3.200000e+01 : f32
    %186 = vector.broadcast %cst_76 : f32 to vector<16x1xf32>
    %187 = arith.divf %185, %186 : vector<16x1xf32>
    %188 = vector.broadcast %187 : vector<16x1xf32> to vector<16x32xf32>
    %189 = arith.subf %183, %188 : vector<16x32xf32>
    %190 = arith.mulf %189, %189 : vector<16x32xf32>
    %cst_77 = arith.constant dense<0.000000e+00> : vector<16xf32>
    %191 = vector.multi_reduction <add>, %190, %cst_77 [1] : vector<16x32xf32> to vector<16xf32>
    %192 = vector.shape_cast %191 : vector<16xf32> to vector<16x1xf32>
    %cst_78 = arith.constant 3.200000e+01 : f32
    %193 = vector.broadcast %cst_78 : f32 to vector<16x1xf32>
    %194 = arith.divf %192, %193 : vector<16x1xf32>
    %195 = vector.broadcast %187 : vector<16x1xf32> to vector<16x32xf32>
    %196 = arith.subf %183, %195 : vector<16x32xf32>
    %cst_79 = arith.constant 9.99999974E-6 : f32
    %197 = vector.broadcast %cst_79 : f32 to vector<16x1xf32>
    %198 = arith.addf %194, %197 : vector<16x1xf32>
    %199 = math.rsqrt %198 : vector<16x1xf32>
    %200 = vector.broadcast %199 : vector<16x1xf32> to vector<16x32xf32>
    %201 = arith.mulf %196, %200 : vector<16x32xf32>
    %c0_80 = arith.constant 0 : index
    %c0_81 = arith.constant 0 : index
    %202 = vector.load %arg8[%c0_80, %c0_81] : memref<1x32xf32, #tpu.memory_space<vmem>>, vector<1x32xf32>
    %203 = vector.broadcast %202 : vector<1x32xf32> to vector<16x32xf32>
    %204 = arith.mulf %201, %203 : vector<16x32xf32>
    %c0_82 = arith.constant 0 : index
    %c0_83 = arith.constant 0 : index
    %205 = vector.load %arg9[%c0_82, %c0_83] : memref<1x32xf32, #tpu.memory_space<vmem>>, vector<1x32xf32>
    %206 = vector.broadcast %205 : vector<1x32xf32> to vector<16x32xf32>
    %207 = arith.addf %204, %206 : vector<16x32xf32>
    %c0_84 = arith.constant 0 : index
    %c0_85 = arith.constant 0 : index
    %208 = vector.load %arg10[%c0_84, %c0_85] : memref<32x128xf32, #tpu.memory_space<vmem>>, vector<32x128xf32>
    %cst_86 = arith.constant dense<0.000000e+00> : vector<16x128xf32>
    %209 = tpu.matmul %207, %208, %cst_86 {dimension_numbers = #tpu.dot_dimension_numbers<[1], [0], [0], [1], [0, 0, 1, 1], [], []>} : vector<16x32xf32>, vector<32x128xf32>, vector<16x128xf32> -> vector<16x128xf32>
    %c0_87 = arith.constant 0 : index
    %c0_88 = arith.constant 0 : index
    %210 = vector.load %arg11[%c0_87, %c0_88] : memref<1x128xf32, #tpu.memory_space<vmem>>, vector<1x128xf32>
    %211 = vector.broadcast %210 : vector<1x128xf32> to vector<16x128xf32>
    %212 = arith.addf %209, %211 : vector<16x128xf32>
    %cst_89 = arith.constant 5.000000e-01 : f32
    %213 = vector.broadcast %cst_89 : f32 to vector<16x128xf32>
    %214 = arith.mulf %213, %212 : vector<16x128xf32>
    %cst_90 = arith.constant 0.707106769 : f32
    %215 = vector.broadcast %cst_90 : f32 to vector<16x128xf32>
    %216 = arith.mulf %212, %215 : vector<16x128xf32>
    %217 = math.erf %216 : vector<16x128xf32>
    %cst_91 = arith.constant 1.000000e+00 : f32
    %218 = vector.broadcast %cst_91 : f32 to vector<16x128xf32>
    %219 = arith.addf %218, %217 : vector<16x128xf32>
    %220 = arith.mulf %214, %219 : vector<16x128xf32>
    %c0_92 = arith.constant 0 : index
    %c0_93 = arith.constant 0 : index
    %221 = vector.load %arg12[%c0_92, %c0_93] : memref<128x32xf32, #tpu.memory_space<vmem>>, vector<128x32xf32>
    %cst_94 = arith.constant dense<0.000000e+00> : vector<16x32xf32>
    %222 = tpu.matmul %220, %221, %cst_94 {dimension_numbers = #tpu.dot_dimension_numbers<[1], [0], [0], [1], [0, 0, 1, 1], [], []>} : vector<16x128xf32>, vector<128x32xf32>, vector<16x32xf32> -> vector<16x32xf32>
    %c0_95 = arith.constant 0 : index
    %c0_96 = arith.constant 0 : index
    %223 = vector.load %arg13[%c0_95, %c0_96] : memref<1x32xf32, #tpu.memory_space<vmem>>, vector<1x32xf32>
    %224 = vector.broadcast %223 : vector<1x32xf32> to vector<16x32xf32>
    %225 = arith.addf %222, %224 : vector<16x32xf32>
    %226 = arith.addf %183, %225 : vector<16x32xf32>
    %c0_97 = arith.constant 0 : index
    %c0_98 = arith.constant 0 : index
    %227 = vector.load %arg14[%c0_97, %c0_98] : memref<16x32xf32, #tpu.memory_space<vmem>>, vector<16x32xf32>
    tpu.vector_store %arg14[%c0_97, %c0_98], %226 {strides = array<i32>} : memref<16x32xf32, #tpu.memory_space<vmem>>, vector<16x32xf32>,
    return
  }
  func.func @transform_0(%arg0: i32) -> (i32, i32) {
    %c0_i32 = arith.constant 0 : i32
    %c0_i32_0 = arith.constant 0 : i32
    return %arg0, %c0_i32 : i32, i32
  }
  func.func @transform_1(%arg0: i32) -> (i32, i32) {
    %c0_i32 = arith.constant 0 : i32
    %c0_i32_0 = arith.constant 0 : i32
    return %arg0, %c0_i32 : i32, i32
  }
  func.func @transform_2(%arg0: i32) -> (i32, i32) {
    %c0_i32 = arith.constant 0 : i32
    %c0_i32_0 = arith.constant 0 : i32
    return %arg0, %c0_i32 : i32, i32
  }
  func.func @transform_3(%arg0: i32) -> (i32, i32) {
    %c0_i32 = arith.constant 0 : i32
    %c0_i32_0 = arith.constant 0 : i32
    %c0_i32_1 = arith.constant 0 : i32
    return %c0_i32, %c0_i32_0 : i32, i32
  }
  func.func @transform_4(%arg0: i32) -> (i32, i32) {
    %c0_i32 = arith.constant 0 : i32
    %c0_i32_0 = arith.constant 0 : i32
    %c0_i32_1 = arith.constant 0 : i32
    return %c0_i32, %c0_i32_0 : i32, i32
  }
  func.func @transform_5(%arg0: i32) -> (i32, i32) {
    %c0_i32 = arith.constant 0 : i32
    %c0_i32_0 = arith.constant 0 : i32
    %c0_i32_1 = arith.constant 0 : i32
    return %c0_i32, %c0_i32_0 : i32, i32
  }
  func.func @transform_6(%arg0: i32) -> (i32, i32) {
    %c0_i32 = arith.constant 0 : i32
    %c0_i32_0 = arith.constant 0 : i32
    %c0_i32_1 = arith.constant 0 : i32
    return %c0_i32, %c0_i32_0 : i32, i32
  }
  func.func @transform_7(%arg0: i32) -> (i32, i32) {
    %c0_i32 = arith.constant 0 : i32
    %c0_i32_0 = arith.constant 0 : i32
    %c0_i32_1 = arith.constant 0 : i32
    return %c0_i32, %c0_i32_0 : i32, i32
  }
  func.func @transform_8(%arg0: i32) -> (i32, i32) {
    %c0_i32 = arith.constant 0 : i32
    %c0_i32_0 = arith.constant 0 : i32
    %c0_i32_1 = arith.constant 0 : i32
    return %c0_i32, %c0_i32_0 : i32, i32
  }
  func.func @transform_9(%arg0: i32) -> (i32, i32) {
    %c0_i32 = arith.constant 0 : i32
    %c0_i32_0 = arith.constant 0 : i32
    %c0_i32_1 = arith.constant 0 : i32
    return %c0_i32, %c0_i32_0 : i32, i32
  }
  func.func @transform_10(%arg0: i32) -> (i32, i32) {
    %c0_i32 = arith.constant 0 : i32
    %c0_i32_0 = arith.constant 0 : i32
    %c0_i32_1 = arith.constant 0 : i32
    return %c0_i32, %c0_i32_0 : i32, i32
  }
  func.func @transform_11(%arg0: i32) -> (i32, i32) {
    %c0_i32 = arith.constant 0 : i32
    %c0_i32_0 = arith.constant 0 : i32
    %c0_i32_1 = arith.constant 0 : i32
    return %c0_i32, %c0_i32_0 : i32, i32
  }
  func.func @transform_12(%arg0: i32) -> (i32, i32) {
    %c0_i32 = arith.constant 0 : i32
    %c0_i32_0 = arith.constant 0 : i32
    %c0_i32_1 = arith.constant 0 : i32
    return %c0_i32, %c0_i32_0 : i32, i32
  }
  func.func @transform_13(%arg0: i32) -> (i32, i32) {
    %c0_i32 = arith.constant 0 : i32
    %c0_i32_0 = arith.constant 0 : i32
    return %arg0, %c0_i32 : i32, i32
  }
}

</mosaic_0001>

<bundles_post_ra>
// kernel: tpu_custom_call.1
= control target key start
LH: loop header
LB: loop body
LE: loop exit
PB: predicated region body
PF: predicated region fallthrough
CT: control target
= control target key end

     0   :  { %vm47_vm0 = vcmask 261120   ;;  %s2694_s0 = inlined_call_operand.vmem [shape: f32[16,32], index: 0, kind: input, shape index: {}]   ;;  %s2695_s1 = inlined_call_operand.vmem [shape: f32[16,32], index: 1, kind: input, shape index: {}]   ;;  %s2696_s2 = inlined_call_operand.vmem [shape: f32[16,32], index: 2, kind: input, shape index: {}]   ;;  %s2697_s3 = inlined_call_operand.vmem [shape: f32[32,96], index: 3, kind: input, shape index: {}]   ;;  %s2698_s4 = inlined_call_operand.vmem [shape: f32[1,96], index: 4, kind: input, shape index: {}]   ;;  %s2699_s5 = inlined_call_operand.vmem [shape: f32[32,32], index: 5, kind: input, shape index: {}]   ;;  %s2700_s6 = inlined_call_operand.vmem [shape: f32[1,32], index: 6, kind: input, shape index: {}]   ;;  %s2701_s7 = inlined_call_operand.vmem [shape: f32[1,32], index: 7, kind: input, shape index: {}]   ;;  %s2702_s8 = inlined_call_operand.vmem [shape: f32[1,32], index: 8, kind: input, shape index: {}]   ;;  %s2703_s9 = inlined_call_operand.vmem [shape: f32[32,128], index: 9, kind: input, shape index: {}]   ;;  %s2704_s10 = inlined_call_operand.vmem [shape: f32[1,128], index: 10, kind: input, shape index: {}]   ;;  %s2705_s11 = inlined_call_operand.vmem [shape: f32[128,32], index: 11, kind: input, shape index: {}]   ;;  %s2706_s12 = inlined_call_operand.vmem [shape: f32[1,32], index: 12, kind: input, shape index: {}]   ;;  %s2707_s13 = inlined_call_operand.hbm [shape: f32[16,32], index: 13, kind: output, shape index: {}]  }
   0x1   :  { %v2384_v0 = vld [vmem:[%s2694_s0] sm:$0xff]  ;;  %v2389_v1 = vld [vmem:[%s2694_s0 + $0x8] sm:$0xff] }
   0x2   :  { %18 = vsyncpa [#allocation4], 0  ;;  %v48_v2 = vsel %vm47_vm0, %v2384_v0, 0.0  ;;  %v51_v3 = vsel %vm47_vm0, %v2389_v1, 0.0  ;;  %v85_v14 = vld [vmem:[%s2697_s3] sm:$0xff]  ;;  %v86_v15 = vld [vmem:[%s2697_s3 + $0x8] sm:$0xff] }
   0x3   :  { %49 = vadd.xlane.f32.xlu0 %v48_v2  ;;  %v87_v16 = vld [vmem:[%s2697_s3 + $0x10] sm:$0xff]  ;;  %v2151_v17 = vpack.c.bf16 %v86_v15, %v85_v14  ;;  %v88_v18 = vld [vmem:[%s2697_s3 + $0x18] sm:$0xff]  ;;  %v75_v26 = vld [vmem:[%s2695_s1] sm:$0xff]  ;;  %v2293_v40 = vmov 0.0   ;;  %vm2294_vm1 = vmmov 0   ;;  %s2295_s26 = smov 88  }
   0x4   :  { %v2155_v19 = vpack.c.bf16 %v88_v18, %v87_v16  ;;  %v77_v27 = vadd.f32 1.0, %v75_v26  ;;  %v76_v29 = vld [vmem:[%s2695_s1 + $0x8] sm:$0xff]  ;;  %v81_v31 = vld [vmem:[%s2696_s2] sm:$0xff]  ;;  %2024 = vmatprep.subr.mxu0 %v2293_v40  ;;  %2026 = vmatprep.mubr.msk.f32.mxu0 %vm2294_vm1, %v2293_v40  ;;  %s2296_s27 = smov 96   ;;  %s2297_s28 = smov 120   ;;  %vm180_vm2 = vcmask 64512  }
   0x5   :  { %2152 = vmatprep.subr.bf16.mxu1 %v2151_v17  ;;  %v78_v33 = vadd.f32 1.0, %v76_v29  ;;  %v82_v37 = vld [vmem:[%s2696_s2 + $0x8] sm:$0xff]  ;;  %v1899_v41 = vld [vmem:[%s2698_s4] ss:$0 sm:$0xff]  ;;  %s2298_s0 = smov 112   ;;  %s2299_s29 = smov 80  }
   0x6   :  { %2154 = vmatpush3.bf16.msra.mxu1 %v2151_v17  ;;  %s2300_s4 = smov 104   ;;  %s2301_s30 = smov 72   ;;  %vm514_vm3 = vcmask 130112   ;;  %vm686_vm4 = vcmask 195712   ;;  %vm858_vm5 = vcmask 261312  }
   0x7   :  { %52 = vadd.xlane.f32.xlu0 %v51_v3  ;;  %2156 = vmatprep.subr.bf16.mxu1 %v2155_v19  ;;  %s2302_s14 = smov 64   ;;  %s2303_s15 = smov 48  }
   0x8   :  { %s2304_s16 = smov 40   ;;  %s2305_s17 = smov 56  }
   0x9   :  { %s2306_s18 = smov 8   ;;  %s2307_s19 = smov 16  }
   0xa   :  { %2158 = vmatpush3.bf16.msra.mxu1 %v2155_v19  ;;  %s2308_s20 = smov 24   ;;  %s2309_s1 = smov [#allocation3]  }
   0xb   :  { %2014 = vmatprep.subr.mxu1 %v2293_v40  ;;  %s1888_s2 = sshll.u32 %s2309_s1, 4  ;;  %s1889_s2 = int_to_ptr.vmem [resolvable:$true] %s1888_s2 }
   0xc   :  { %p2274_p1 = scmp.lt.s32.totalorder %s1889_s2, %s1889_s2 }
  0x90   :  { %v50_v4 = vpop.xlane.xlu0 %49 }
  0x91   :  { %v55_v5 = vmul.f32 0.03125, %v50_v4 }
  0x93   :  { %v57_v6 = vsub.f32 %v2384_v0, %v55_v5 }
  0x94   :  { %v53_v7 = vpop.xlane.xlu0 %52 }
  0x95   :  { %v56_v8 = vmul.f32 0.03125, %v53_v7  ;;  %v59_v9 = vmul.f32 %v57_v6, %v57_v6 }
  0x97   :  { %v58_v10 = vsub.f32 %v2389_v1, %v56_v8  ;;  %v61_v11 = vsel %vm47_vm0, %v59_v9, 0.0 }
  0x98   :  { %62 = vadd.xlane.f32.xlu1 %v61_v11 }
  0x99   :  { %v60_v12 = vmul.f32 %v58_v10, %v58_v10 }
  0x9b   :  { %v64_v13 = vsel %vm47_vm0, %v60_v12, 0.0 }
  0x9c   :  { %65 = vadd.xlane.f32.xlu1 %v64_v13 }
 0x125   :  { %v63_v20 = vpop.xlane.xlu1 %62 }
 0x126   :  { %v67_v21 = vmul.f32 0.03125, %v63_v20 }
 0x128   :  { %v69_v22 = vadd.f32 1e-05, %v67_v21 }
 0x129   :  { %v66_v23 = vpop.xlane.xlu1 %65 }
 0x12a   :  { %2225 = vrsqrt.f32 %v69_v22  ;;  %v68_v24 = vmul.f32 0.03125, %v66_v23 }
 0x12c   :  { %v70_v25 = vadd.f32 1e-05, %v68_v24 }
 0x12e   :  { %2227 = vrsqrt.f32 %v70_v25 }
 0x134   :  { %v2226_v28 = vpop.eup %2225 }
 0x135   :  { %v73_v30 = vmul.f32 %v2226_v28, %v57_v6 }
 0x137   :  { %v79_v32 = vmul.f32 %v77_v27, %v73_v30 }
 0x138   :  { %v2228_v34 = vpop.eup %2227 }
 0x139   :  { %v83_v35 = vadd.f32 %v81_v31, %v79_v32  ;;  %v74_v36 = vmul.f32 %v2228_v34, %v58_v10 }
 0x13b   :  { %2011 = vmatprep.mubr.msk.f32.mxu1 %vm47_vm0, %v83_v35  ;;  %v80_v38 = vmul.f32 %v78_v33, %v74_v36 }
 0x13d   :  { %v84_v39 = vadd.f32 %v82_v37, %v80_v38 }
 0x13f   :  { %2012 = vmatmul.mubr.msk.f32.vlgmr.msra.gmra.mrb[0].mxu1 %vm47_vm0, %v84_v39 }
 0x140   :  { %2016 = vmatprep.mubr.msk.f32.mxu1 %vm2294_vm1, %v2293_v40 }
 0x212   :  { %v2013_v42 = vpop.f32.mrb[0].mxu1 }
 0x213   :  { %v168_v43 = vpop.f32.mrb[1].mxu1  ;;  %v2442_v45 = vadd.f32 %v2013_v42, %v1899_v41 }
 0x214   :  { %v2434_v44 = vadd.f32 %v1899_v41, %v168_v43 }
 0x216   :  { %346 = vrot.lane.b32.xlu1 %v2434_v44, %s2295_s26  ;;  %178 = vrot.lane.b32.xlu0 %v2434_v44, %s2296_s27 }
 0x21a   :  { %344 = vrot.lane.b32.xlu1 %v2434_v44, %s2297_s28  ;;  %516 = vrot.lane.b32.xlu0 %v2434_v44, %s2298_s0 }
 0x21e   :  { %518 = vrot.lane.b32.xlu1 %v2434_v44, %s2299_s29  ;;  %688 = vrot.lane.b32.xlu0 %v2434_v44, %s2300_s4 }
 0x222   :  { %690 = vrot.lane.b32.xlu1 %v2434_v44, %s2301_s30  ;;  %1028 = vrot.lane.b32.xlu0 %v2442_v45, %s2295_s26 }
 0x226   :  { %861 = vrot.lane.b32.xlu1 %v2442_v45, %s2296_s27  ;;  %1199 = vrot.lane.b32.xlu0 %v2442_v45, %s2299_s29 }
 0x22a   :  { %1026 = vrot.lane.b32.xlu1 %v2442_v45, %s2297_s28  ;;  %1370 = vrot.lane.b32.xlu0 %v2442_v45, %s2301_s30 }
 0x22e   :  { %1197 = vrot.lane.b32.xlu1 %v2442_v45, %s2298_s0 }
 0x232   :  { %1368 = vrot.lane.b32.xlu1 %v2442_v45, %s2300_s4 }
 0x288   :  { %v347_v46 = vpop.permute.xlu1 %346  ;;  %v179_v47 = vpop.permute.xlu0 %178 }
 0x289   :  { %2015 = vmatpush3.xpose.msk.msra.mxu1 %vm180_vm2, %v179_v47  ;;  %2025 = vmatpush3.xpose.msk.msra.mxu0 %vm180_vm2, %v347_v46 }
 0x28a   :  { %2034 = vmatprep.subr.mxu0 %v2293_v40  ;;  %2019 = vmatprep.subr.mxu1 %v2293_v40 }
 0x28c   :  { %v345_v48 = vpop.permute.xlu1 %344  ;;  %2017 = vmatmul.mubr.msk.f32.vlgmr.msra.gmra.mrb[2].mxu1 %vm180_vm2, %v2434_v44  ;;  %v517_v49 = vpop.permute.xlu0 %516 }
 0x28d   :  { %2027 = vmatmul.mubr.msk.f32.vlgmr.msra.gmra.mrb[0].mxu0 %vm180_vm2, %v345_v48  ;;  %2021 = vmatprep.mubr.msk.f32.mxu1 %vm2294_vm1, %v2293_v40 }
 0x28e   :  { %2036 = vmatprep.mubr.msk.f32.mxu0 %vm2294_vm1, %v2293_v40 }
 0x290   :  { %v519_v50 = vpop.permute.xlu1 %518  ;;  %v689_v51 = vpop.permute.xlu0 %688 }
 0x291   :  { %2035 = vmatpush3.xpose.msk.msra.mxu0 %vm180_vm2, %v519_v50 }
 0x292   :  { %2044 = vmatprep.subr.mxu0 %v2293_v40 }
 0x294   :  { %v691_v52 = vpop.permute.xlu1 %690  ;;  %2037 = vmatmul.mubr.msk.f32.vlgmr.msra.gmra.mrb[2].mxu0 %vm180_vm2, %v517_v49  ;;  %v1029_v53 = vpop.permute.xlu0 %1028 }
 0x295   :  { %2045 = vmatpush3.xpose.msk.msra.mxu0 %vm180_vm2, %v691_v52  ;;  %2046 = vmatprep.mubr.msk.f32.mxu0 %vm2294_vm1, %v2293_v40 }
 0x296   :  { %2054 = vmatprep.subr.mxu0 %v2293_v40 }
 0x298   :  { %v862_v54 = vpop.permute.xlu1 %861  ;;  %2047 = vmatmul.mubr.msk.f32.vlgmr.msra.gmra.mrb[4].mxu0 %vm180_vm2, %v689_v51  ;;  %v1200_v56 = vpop.permute.xlu0 %1199 }
 0x299   :  { %2055 = vmatpush3.xpose.msk.msra.mxu0 %vm180_vm2, %v862_v54  ;;  %2056 = vmatprep.mubr.msk.f32.mxu0 %vm2294_vm1, %v2293_v40 }
 0x29a   :  { %2064 = vmatprep.subr.mxu0 %v2293_v40 }
 0x29c   :  { %v1027_v55 = vpop.permute.xlu1 %1026  ;;  %2057 = vmatmul.mubr.msk.f32.vlgmr.msra.gmra.mrb[6].mxu0 %vm180_vm2, %v2442_v45  ;;  %v1371_v58 = vpop.permute.xlu0 %1370 }
 0x29d   :  { %2065 = vmatpush3.xpose.msk.msra.mxu0 %vm180_vm2, %v1029_v53  ;;  %2066 = vmatprep.mubr.msk.f32.mxu0 %vm2294_vm1, %v2293_v40 }
 0x29e   :  { %2074 = vmatprep.subr.mxu0 %v2293_v40 }
 0x2a0   :  { %2067 = vmatmul.mubr.msk.f32.vlgmr.msra.gmra.mrb[8].mxu0 %vm180_vm2, %v1027_v55  ;;  %v1198_v57 = vpop.permute.xlu1 %1197 }
 0x2a1   :  { %2075 = vmatpush3.xpose.msk.msra.mxu0 %vm180_vm2, %v1200_v56  ;;  %2076 = vmatprep.mubr.msk.f32.mxu0 %vm2294_vm1, %v2293_v40 }
 0x2a2   :  { %2084 = vmatprep.subr.mxu0 %v2293_v40 }
 0x2a4   :  { %2077 = vmatmul.mubr.msk.f32.vlgmr.msra.gmra.mrb[10].mxu0 %vm180_vm2, %v1198_v57  ;;  %v1369_v59 = vpop.permute.xlu1 %1368 }
 0x2a5   :  { %2085 = vmatpush3.xpose.msk.msra.mxu0 %vm180_vm2, %v1371_v58  ;;  %2086 = vmatprep.mubr.msk.f32.mxu0 %vm2294_vm1, %v2293_v40 }
 0x2a8   :  { %2087 = vmatmul.mubr.msk.f32.vlgmr.msra.gmra.mrb[12].mxu0 %vm180_vm2, %v1369_v59 }
 0x35f   :  { %v251_v60 = vpop.f32.mrb[2].mxu1 }
 0x360   :  { %v255_v61 = vmul.f32 0.35355338, %v251_v60  ;;  %v2018_v62 = vpop.f32.mrb[3].mxu1  ;;  %v418_v63 = vpop.f32.mrb[0].mxu0 }
 0x361   :  { %v422_v2 = vmul.f32 0.35355338, %v418_v63  ;;  %v2028_v3 = vpop.f32.mrb[1].mxu0 }
 0x362   :  { %v256_v4 = vsel %vm180_vm2, %v255_v61, -inf }
 0x363   :  { %257 = vmax.xlane.f32.xlu0 %v256_v4  ;;  %v423_v5 = vsel %vm180_vm2, %v422_v2, -inf }
 0x364   :  { %424 = vmax.xlane.f32.xlu1 %v423_v5 }
 0x367   :  { %v590_v6 = vpop.f32.mrb[2].mxu0 }
 0x368   :  { %v2493_v7 = vmul.f32 0.35355338, %v590_v6  ;;  %v2038_v8 = vpop.f32.mrb[3].mxu0 }
 0x36a   :  { %v595_v9 = vsel %vm180_vm2, %v2493_v7, -inf }
 0x36b   :  { %596 = vmax.xlane.f32.xlu0 %v595_v9  ;;  %v762_v10 = vpop.f32.mrb[4].mxu0 }
 0x36c   :  { %v766_v11 = vmul.f32 0.35355338, %v762_v10  ;;  %v2048_v12 = vpop.f32.mrb[5].mxu0 }
 0x36e   :  { %v767_v13 = vsel %vm180_vm2, %v766_v11, -inf }
 0x36f   :  { %768 = vmax.xlane.f32.xlu0 %v767_v13  ;;  %v933_v14 = vpop.f32.mrb[6].mxu0 }
 0x370   :  { %v937_v15 = vmul.f32 0.35355338, %v933_v14  ;;  %v2058_v16 = vpop.f32.mrb[7].mxu0 }
 0x372   :  { %v938_v17 = vsel %vm180_vm2, %v937_v15, -inf }
 0x373   :  { %939 = vmax.xlane.f32.xlu0 %v938_v17  ;;  %v1100_v18 = vpop.f32.mrb[8].mxu0 }
 0x374   :  { %v1104_v19 = vmul.f32 0.35355338, %v1100_v18  ;;  %v2068_v20 = vpop.f32.mrb[9].mxu0 }
 0x376   :  { %v1105_v21 = vsel %vm180_vm2, %v1104_v19, -inf }
 0x377   :  { %1106 = vmax.xlane.f32.xlu1 %v1105_v21  ;;  %v1271_v22 = vpop.f32.mrb[10].mxu0 }
 0x378   :  { %v1275_v23 = vmul.f32 0.35355338, %v1271_v22  ;;  %v2078_v24 = vpop.f32.mrb[11].mxu0 }
 0x37a   :  { %v1276_v25 = vsel %vm180_vm2, %v1275_v23, -inf }
 0x37b   :  { %1277 = vmax.xlane.f32.xlu0 %v1276_v25  ;;  %v1442_v26 = vpop.f32.mrb[12].mxu0 }
 0x37c   :  { %v2088_v27 = vpop.f32.mrb[13].mxu0  ;;  %v1446_v28 = vmul.f32 0.35355338, %v1442_v26 }
 0x37e   :  { %v1447_v29 = vsel %vm180_vm2, %v1446_v28, -inf }
 0x388   :  { %267 = vrot.lane.b32.xlu1 %v2434_v44, %s2302_s14 }
 0x3ac   :  { %1448 = vmax.xlane.f32.xlu1 %v1447_v29 }
 0x3bd   :  { %606 = vrot.lane.b32.xlu1 %v2434_v44, %s2303_s15 }
 0x3c1   :  { %778 = vrot.lane.b32.xlu1 %v2434_v44, %s2304_s16 }
 0x3c5   :  { %949 = vrot.lane.b32.xlu1 %v2442_v45, %s2302_s14 }
 0x3f0   :  { %v258_v30 = vpop.xlane.xlu0 %257 }
 0x3f1   :  { %v259_v31 = vsub.f32 %v255_v61, %v258_v30  ;;  %v425_v32 = vpop.xlane.xlu1 %424 }
 0x3f2   :  { %v426_v33 = vsub.f32 %v422_v2, %v425_v32 }
 0x3f3   :  { %v260_v34 = vmul.f32 1.442695, %v259_v31 }
 0x3f4   :  { %v427_v35 = vmul.f32 1.442695, %v426_v33 }
 0x3f5   :  { %2229 = vpow2.f32 %v260_v34 }
 0x3f6   :  { %2231 = vpow2.f32 %v427_v35 }
 0x3f8   :  { %v597_v36 = vpop.xlane.xlu0 %596 }
 0x3f9   :  { %v598_v51 = vsub.f32 %v2493_v7, %v597_v36 }
 0x3fb   :  { %v599_v53 = vmul.f32 1.442695, %v598_v51  ;;  %v1541_v51 = vld [vmem:[%s2699_s5] sm:$0xff] }
 0x3fc   :  { %v769_v37 = vpop.xlane.xlu0 %768 }
 0x3fd   :  { %v770_v38 = vsub.f32 %v766_v11, %v769_v37 }
 0x3ff   :  { %v2230_v39 = vpop.eup %2229  ;;  %v771_v41 = vmul.f32 1.442695, %v770_v38 }
 0x400   :  { %v2508_v42 = vpop.eup %2231  ;;  %v262_v43 = vsel %vm180_vm2, %v2230_v39, 0.0  ;;  %v940_v52 = vpop.xlane.xlu0 %939 }
 0x401   :  { %2233 = vpow2.f32 %v771_v41  ;;  %263 = vadd.xlane.f32.xlu0 %v262_v43  ;;  %v429_v46 = vsel %vm180_vm2, %v2508_v42, 0.0  ;;  %v941_v54 = vsub.f32 %v937_v15, %v940_v52  ;;  %v1542_v52 = vld [vmem:[%s2699_s5 + $0x8] sm:$0xff] }
 0x402   :  { %430 = vadd.xlane.f32.xlu1 %v429_v46  ;;  %2235 = vpow2.f32 %v599_v53  ;;  %v2159_v53 = vpack.c.bf16 %v1542_v52, %v1541_v51  ;;  %v1930_v52 = vld [vmem:[%s2702_s8] ss:$0 sm:$0xff] }
 0x403   :  { %v942_v56 = vmul.f32 1.442695, %v941_v54 }
 0x404   :  { %v1107_v47 = vpop.xlane.xlu1 %1106 }
 0x405   :  { %2237 = vpow2.f32 %v942_v56  ;;  %v1108_v58 = vsub.f32 %v1104_v19, %v1107_v47  ;;  %v1544_v56 = vld [vmem:[%s2699_s5 + $0x18] sm:$0xff] }
 0x407   :  { %v1109_v60 = vmul.f32 1.442695, %v1108_v58 }
 0x408   :  { %v268_v48 = vpop.permute.xlu1 %267  ;;  %v1278_v55 = vpop.xlane.xlu0 %1277 }
 0x409   :  { %2020 = vmatpush3.msra.mxu1 %v268_v48  ;;  %v1279_v57 = vsub.f32 %v1275_v23, %v1278_v55  ;;  %v1543_v55 = vld [vmem:[%s2699_s5 + $0x10] sm:$0xff]  ;;  %s2269_s5 = scalar_lea.vmem %s1889_s2, 256 }
 0x40a   :  { %2029 = vmatprep.subr.mxu1 %v2293_v40  ;;  %v2163_v58 = vpack.c.bf16 %v1544_v56, %v1543_v55  ;;  %p2270_p0 = scmp.ne.s32.totalorder %s1889_s2, %s2269_s5  ;;  %p2275_p2 = scmp.lt.s32.totalorder %s2269_s5, %s2269_s5 }
 0x40b   :  { %v2514_v49 = vpop.eup %2233  ;;  %v1280_v59 = vmul.f32 1.442695, %v1279_v57 }
 0x40c   :  { %v773_v50 = vsel %vm180_vm2, %v2514_v49, 0.0  ;;  %v2236_v61 = vpop.eup %2235  ;;  %p2276_p3 = por %p2275_p2, %p2274_p1 }
 0x40d   :  { %774 = vadd.xlane.f32.xlu1 %v773_v50  ;;  %2239 = vpow2.f32 %v1280_v59 }
 0x40e   :  { %2241 = vpow2.f32 %v1109_v60  ;;  %p2277_p4 = pnand %p2276_p3, %p2270_p0 }
 0x40f   :  { %v2238_v62 = vpop.eup %2237 }
 0x410   :  { %v944_v2 = vsel %vm180_vm2, %v2238_v62, 0.0 }
 0x417   :  { %434 = vrot.lane.b32.xlu0 %v2434_v44, %s2305_s17  ;;  %v601_v44 = vsel %vm180_vm2, %v2236_v61, 0.0  ;;  %v2523_v3 = vpop.eup %2239 }
 0x418   :  { %v1282_v6 = vsel %vm180_vm2, %v2523_v3, 0.0  ;;  %v2242_v7 = vpop.eup %2241 }
 0x419   :  { %v1111_v8 = vsel %vm180_vm2, %v2242_v7, 0.0 }
 0x41e   :  { %1116 = vrot.lane.b32.xlu1 %v2442_v45, %s2305_s17 }
 0x436   :  { %602 = vadd.xlane.f32.xlu0 %v601_v44 }
 0x439   :  { %v1449_v63 = vpop.xlane.xlu1 %1448 }
 0x43a   :  { %v1450_v4 = vsub.f32 %v1446_v28, %v1449_v63  ;;  %945 = vadd.xlane.f32.xlu0 %v944_v2 }
 0x43c   :  { %v1451_v5 = vmul.f32 1.442695, %v1450_v4 }
 0x43d   :  { %v607_v11 = vpop.permute.xlu1 %606 }
 0x43e   :  { %2243 = vpow2.f32 %v1451_v5  ;;  %1283 = vadd.xlane.f32.xlu0 %v1282_v6 }
 0x441   :  { %v779_v12 = vpop.permute.xlu1 %778 }
 0x442   :  { %1112 = vadd.xlane.f32.xlu1 %v1111_v8 }
 0x445   :  { %v950_v13 = vpop.permute.xlu1 %949 }
 0x448   :  { %v2528_v9 = vpop.eup %2243 }
 0x449   :  { %v1453_v10 = vsel %vm180_vm2, %v2528_v9, 0.0 }
 0x44a   :  { %1454 = vadd.xlane.f32.xlu0 %v1453_v10  ;;  %v1926_v10 = vld [vmem:[%s2700_s6] ss:$0 sm:$0xff] }
 0x453   :  { %1458 = vrot.lane.b32.xlu1 %v2442_v45, %s2304_s16 }
 0x460   :  { %1287 = vrot.lane.b32.xlu0 %v2442_v45, %s2303_s15 }
 0x48e   :  { %v264_v14 = vpop.xlane.xlu0 %263 }
 0x48f   :  { %2245 = vrcp.f32 %v264_v14  ;;  %v431_v15 = vpop.xlane.xlu1 %430 }
 0x490   :  { %2247 = vrcp.f32 %v431_v15 }
 0x492   :  { %v435_v19 = vpop.permute.xlu0 %434 }
 0x499   :  { %v2246_v16 = vpop.eup %2245 }
 0x49a   :  { %v266_v17 = vmul.f32 %v2246_v16, %v2230_v39  ;;  %v2248_v18 = vpop.eup %2247  ;;  %v775_v45 = vpop.xlane.xlu1 %774 }
 0x49b   :  { %v433_v20 = vmul.f32 %v2248_v18, %v2508_v42 }
 0x49c   :  { %2022 = vmatmul.mubr.msk.f32.vlgmr.msra.gmra.mrb[4].mxu1 %vm180_vm2, %v266_v17 }
 0x49d   :  { %2030 = vmatpush3.msra.mxu1 %v435_v19  ;;  %2031 = vmatprep.mubr.msk.f32.mxu1 %vm2294_vm1, %v2293_v40 }
 0x49e   :  { %2039 = vmatprep.subr.mxu1 %v2293_v40  ;;  %v1117_v23 = vpop.permute.xlu1 %1116 }
 0x4a0   :  { %2032 = vmatmul.mubr.msk.f32.vlgmr.msra.gmra.mrb[6].mxu1 %vm180_vm2, %v433_v20 }
 0x4a1   :  { %2040 = vmatpush3.msra.mxu1 %v607_v11  ;;  %2041 = vmatprep.mubr.msk.f32.mxu1 %vm2294_vm1, %v2293_v40 }
 0x4a2   :  { %2049 = vmatprep.subr.mxu1 %v2293_v40 }
 0x4c3   :  { %v603_v21 = vpop.xlane.xlu0 %602 }
 0x4c4   :  { %2249 = vrcp.f32 %v603_v21 }
 0x4c5   :  { %2251 = vrcp.f32 %v775_v45 }
 0x4c7   :  { %v946_v22 = vpop.xlane.xlu0 %945 }
 0x4c8   :  { %2253 = vrcp.f32 %v946_v22 }
 0x4cb   :  { %v1284_v26 = vpop.xlane.xlu0 %1283 }
 0x4ce   :  { %v2250_v24 = vpop.eup %2249 }
 0x4cf   :  { %v605_v25 = vmul.f32 %v2250_v24, %v2236_v61  ;;  %v1113_v27 = vpop.xlane.xlu1 %1112  ;;  %v2252_v28 = vpop.eup %2251 }
 0x4d0   :  { %2255 = vrcp.f32 %v1113_v27  ;;  %v777_v29 = vmul.f32 %v2252_v28, %v2514_v49  ;;  %v1680_v27 = vld [vmem:[%s2703_s9 + $0x8] sm:$0xff] }
 0x4d1   :  { %2042 = vmatmul.mubr.msk.f32.vlgmr.msra.gmra.mrb[8].mxu1 %vm180_vm2, %v605_v25  ;;  %2257 = vrcp.f32 %v1284_v26  ;;  %v1679_v26 = vld [vmem:[%s2703_s9] sm:$0xff] }
 0x4d2   :  { %2050 = vmatpush3.msra.mxu1 %v779_v12  ;;  %2051 = vmatprep.mubr.msk.f32.mxu1 %vm2294_vm1, %v2293_v40  ;;  %v2254_v30 = vpop.eup %2253  ;;  %v2167_v28 = vpack.c.bf16 %v1680_v27, %v1679_v26 }
 0x4d3   :  { %2059 = vmatprep.subr.mxu1 %v2293_v40  ;;  %v948_v31 = vmul.f32 %v2254_v30, %v2238_v62  ;;  %v1459_v38 = vpop.permute.xlu1 %1458  ;;  %v1682_v30 = vld [vmem:[%s2703_s9 + $0x18] sm:$0xff] }
 0x4d5   :  { %2052 = vmatmul.mubr.msk.f32.vlgmr.msra.gmra.mrb[10].mxu1 %vm180_vm2, %v777_v29  ;;  %v1681_v29 = vld [vmem:[%s2703_s9 + $0x10] sm:$0xff] }
 0x4d6   :  { %2060 = vmatpush3.msra.mxu1 %v950_v13  ;;  %2061 = vmatprep.mubr.msk.f32.mxu1 %vm2294_vm1, %v2293_v40 }
 0x4d7   :  { %v1455_v32 = vpop.xlane.xlu0 %1454  ;;  %2069 = vmatprep.subr.mxu1 %v2293_v40 }
 0x4d8   :  { %2259 = vrcp.f32 %v1455_v32  ;;  %v1781_v32 = vld [vmem:[%s2705_s11] sm:$0xff] }
 0x4d9   :  { %2062 = vmatmul.mubr.msk.f32.vlgmr.msra.gmra.mrb[12].mxu1 %vm180_vm2, %v948_v31  ;;  %v2171_v31 = vpack.c.bf16 %v1682_v30, %v1681_v29 }
 0x4da   :  { %v2256_v33 = vpop.eup %2255  ;;  %2070 = vmatpush3.msra.mxu1 %v1117_v23  ;;  %2071 = vmatprep.mubr.msk.f32.mxu1 %vm2294_vm1, %v2293_v40 }
 0x4db   :  { %v1115_v34 = vmul.f32 %v2256_v33, %v2242_v7  ;;  %v1288_v35 = vpop.permute.xlu0 %1287  ;;  %2079 = vmatprep.subr.mxu1 %v2293_v40  ;;  %v2258_v36 = vpop.eup %2257  ;;  %v1782_v33 = vld [vmem:[%s2705_s11 + $0x8] sm:$0xff] }
 0x4dc   :  { %v1286_v37 = vmul.f32 %v2258_v36, %v2523_v3  ;;  %v1784_v36 = vld [vmem:[%s2705_s11 + $0x18] sm:$0xff] }
 0x4dd   :  { %2072 = vmatmul.mubr.msk.f32.vlgmr.msra.gmra.mrb[14].mxu1 %vm180_vm2, %v1115_v34  ;;  %v1783_v34 = vld [vmem:[%s2705_s11 + $0x10] sm:$0xff] }
 0x4de   :  { %2080 = vmatpush3.msra.mxu1 %v1288_v35  ;;  %2081 = vmatprep.mubr.msk.f32.mxu1 %vm2294_vm1, %v2293_v40  ;;  %v2175_v35 = vpack.c.bf16 %v1782_v33, %v1781_v32 }
 0x4df   :  { %2089 = vmatprep.subr.mxu1 %v2293_v40 }
 0x4e0   :  { %2176 = vmatprep.subr.bf16.mxu0 %v2175_v35 }
 0x4e1   :  { %2082 = vmatmul.mubr.msk.f32.vlgmr.msra.gmra.mrb[16].mxu1 %vm180_vm2, %v1286_v37  ;;  %v2179_v37 = vpack.c.bf16 %v1784_v36, %v1783_v34  ;;  %2178 = vmatpush3.bf16.msra.mxu0 %v2175_v35 }
 0x4e2   :  { %v2260_v39 = vpop.eup %2259  ;;  %2090 = vmatpush3.msra.mxu1 %v1459_v38  ;;  %2091 = vmatprep.mubr.msk.f32.mxu1 %vm2294_vm1, %v2293_v40  ;;  %v1785_v38 = vld [vmem:[%s2705_s11 + $0x20] sm:$0xff] }
 0x4e3   :  { %v1457_v41 = vmul.f32 %v2260_v39, %v2528_v9  ;;  %2160 = vmatprep.subr.bf16.mxu1 %v2159_v53  ;;  %v1786_v39 = vld [vmem:[%s2705_s11 + $0x28] sm:$0xff]  ;;  %2180 = vmatprep.subr.bf16.mxu0 %v2179_v37 }
 0x4e5   :  { %2092 = vmatmul.mubr.msk.f32.vlgmr.msra.gmra.mrb[18].mxu1 %vm180_vm2, %v1457_v41  ;;  %v2183_v41 = vpack.c.bf16 %v1786_v39, %v1785_v38  ;;  %2182 = vmatpush3.bf16.msra.mxu0 %v2179_v37 }
 0x4e6   :  { %2162 = vmatpush3.bf16.msra.mxu1 %v2159_v53 }
 0x4e7   :  { %2164 = vmatprep.subr.bf16.mxu1 %v2163_v58  ;;  %2184 = vmatprep.subr.bf16.mxu0 %v2183_v41 }
 0x4e9   :  { %2186 = vmatpush3.bf16.msra.mxu0 %v2183_v41 }
 0x4ea   :  { %2166 = vmatpush3.bf16.msra.mxu1 %v2163_v58 }
 0x4eb   :  { %2168 = vmatprep.subr.bf16.mxu1 %v2167_v28 }
 0x56f   :  { %v339_v42 = vpop.f32.mrb[4].mxu1 }
 0x570   :  { %343 = vst.msk [vmem:[#allocation2] sm:$0xff] %vm180_vm2, %v339_v42  ;;  %v2023_v43 = vpop.f32.mrb[5].mxu1 }
 0x573   :  { %v506_v46 = vpop.f32.mrb[6].mxu1 }
 0x574   :  { %511 = vrot.lane.b32.xlu0 %v506_v46, %s2306_s18  ;;  %v2033_v47 = vpop.f32.mrb[7].mxu1 }
 0x5a4   :  { %v678_v48 = vpop.f32.mrb[8].mxu1 }
 0x5a5   :  { %683 = vrot.lane.b32.xlu1 %v678_v48, %s2307_s19  ;;  %v2043_v49 = vpop.f32.mrb[9].mxu1 }
 0x5a8   :  { %v850_v50 = vpop.f32.mrb[10].mxu1 }
 0x5a9   :  { %855 = vrot.lane.b32.xlu1 %v850_v50, %s2308_s20  ;;  %v2053_v40 = vpop.f32.mrb[11].mxu1 }
 0x5aa   :  { %v1929_v40 = vld [vmem:[%s2701_s7] ss:$0 sm:$0xff] }
 0x5ac   :  { %v1021_v54 = vpop.f32.mrb[12].mxu1 }
 0x5ad   :  { %1025 = vst.msk [vmem:[#allocation2 + $0x8] sm:$0xff] %vm180_vm2, %v1021_v54  ;;  %v2063_v57 = vpop.f32.mrb[13].mxu1 }
 0x5b0   :  { %v1188_v59 = vpop.f32.mrb[14].mxu1 }
 0x5b1   :  { %1193 = vrot.lane.b32.xlu0 %v1188_v59, %s2306_s18  ;;  %v2073_v60 = vpop.f32.mrb[15].mxu1  ;;  %v1787_v59 = vld [vmem:[%s2705_s11 + $0x30] sm:$0xff] }
 0x5b2   :  { %v1788_v60 = vld [vmem:[%s2705_s11 + $0x38] sm:$0xff] }
 0x5b4   :  { %v1359_v61 = vpop.f32.mrb[16].mxu1 }
 0x5b5   :  { %1364 = vrot.lane.b32.xlu0 %v1359_v61, %s2307_s19  ;;  %v2083_v44 = vpop.f32.mrb[17].mxu1  ;;  %v2187_v61 = vpack.c.bf16 %v1788_v60, %v1787_v59 }
 0x5b6   :  { %v1789_v44 = vld [vmem:[%s2705_s11 + $0x40] sm:$0xff] }
 0x5b7   :  { %2188 = vmatprep.subr.bf16.mxu0 %v2187_v61 }
 0x5b8   :  { %v1530_v62 = vpop.f32.mrb[18].mxu1  ;;  %2190 = vmatpush3.bf16.msra.mxu0 %v2187_v61 }
 0x5b9   :  { %1535 = vrot.lane.b32.xlu1 %v1530_v62, %s2308_s20  ;;  %v2093_v63 = vpop.f32.mrb[19].mxu1  ;;  %v1790_v62 = vld [vmem:[%s2705_s11 + $0x48] sm:$0xff] }
 0x5ba   :  { %v2191_v63 = vpack.c.bf16 %v1790_v62, %v1789_v44 }
 0x5bc   :  { %2192 = vmatprep.subr.bf16.mxu0 %v2191_v63 }
 0x5bd   :  { %2194 = vmatpush3.bf16.msra.mxu0 %v2191_v63 }
 0x5e6   :  { %v512_v2 = vpop.permute.xlu0 %511 }
 0x5e7   :  { %515 = vst.msk [vmem:[#allocation2] sm:$0xff] %vm514_vm3, %v512_v2  ;;  %v1791_v2 = vld [vmem:[%s2705_s11 + $0x50] sm:$0xff] }
 0x617   :  { %v684_v3 = vpop.permute.xlu1 %683 }
 0x618   :  { %687 = vst.msk [vmem:[#allocation2] sm:$0xff] %vm686_vm4, %v684_v3  ;;  %v1792_v3 = vld [vmem:[%s2705_s11 + $0x58] sm:$0xff] }
 0x61b   :  { %v856_v4 = vpop.permute.xlu1 %855 }
 0x61c   :  { %859 = vst.msk [vmem:[#allocation2] sm:$0xff] %vm858_vm5, %v856_v4  ;;  %v2195_v4 = vpack.c.bf16 %v1792_v3, %v1791_v2 }
 0x61e   :  { %2196 = vmatprep.subr.bf16.mxu0 %v2195_v4 }
 0x61f   :  { %2198 = vmatpush3.bf16.msra.mxu0 %v2195_v4 }
 0x623   :  { %v1194_v5 = vpop.permute.xlu0 %1193  ;;  %v1539_v6 = vld [vmem:[#allocation2] sm:$0xff] }
 0x624   :  { %1196 = vst.msk [vmem:[#allocation2 + $0x8] sm:$0xff] %vm514_vm3, %v1194_v5  ;;  %2102 = vmatprep.mubr.msk.f32.mxu1 %vm47_vm0, %v1539_v6  ;;  %v1793_v5 = vld [vmem:[%s2705_s11 + $0x60] sm:$0xff]  ;;  %v1794_v6 = vld [vmem:[%s2705_s11 + $0x68] sm:$0xff] }
 0x627   :  { %v1365_v7 = vpop.permute.xlu0 %1364 }
 0x628   :  { %1367 = vst.msk [vmem:[#allocation2 + $0x8] sm:$0xff] %vm686_vm4, %v1365_v7  ;;  %v2199_v7 = vpack.c.bf16 %v1794_v6, %v1793_v5 }
 0x62a   :  { %2200 = vmatprep.subr.bf16.mxu0 %v2199_v7 }
 0x62b   :  { %v1536_v8 = vpop.permute.xlu1 %1535  ;;  %2202 = vmatpush3.bf16.msra.mxu0 %v2199_v7 }
 0x62c   :  { %1538 = vst.msk [vmem:[#allocation2 + $0x8] sm:$0xff] %vm858_vm5, %v1536_v8  ;;  %v1795_v8 = vld [vmem:[%s2705_s11 + $0x70] sm:$0xff] }
 0x633   :  { %v1540_v9 = vld [vmem:[#allocation2 + $0x8] sm:$0xff] }
 0x634   :  { %2103 = vmatmul.mubr.msk.f32.vlgmr.msra.gmra.mrb[20].mxu1 %vm47_vm0, %v1540_v9  ;;  %v1796_v9 = vld [vmem:[%s2705_s11 + $0x78] sm:$0xff] }
 0x635   :  { %2170 = vmatpush3.bf16.msra.mxu1 %v2167_v28 }
 0x636   :  { %2172 = vmatprep.subr.bf16.mxu1 %v2171_v31 }
 0x639   :  { %2174 = vmatpush3.bf16.msra.mxu1 %v2171_v31 }
 0x707   :  { %v2104_v11 = vpop.f32.mrb[20].mxu1 }
 0x708   :  { %v1630_v12 = vadd.f32 %v2104_v11, %v1926_v10  ;;  %v1624_v13 = vpop.f32.mrb[21].mxu1  ;;  %v1931_v11 = vld [vmem:[%s2704_s10] ss:$0 sm:$0xff] }
 0x709   :  { %v1625_v14 = vadd.f32 %v1926_v10, %v1624_v13  ;;  %v2203_v10 = vpack.c.bf16 %v1796_v9, %v1795_v8 }
 0x70a   :  { %v2590_v15 = vadd.f32 %v1630_v12, %v2389_v1 }
 0x70b   :  { %v2593_v16 = vadd.f32 %v1625_v14, %v2384_v0  ;;  %2204 = vmatprep.subr.bf16.mxu0 %v2203_v10 }
 0x70c   :  { %v1638_v17 = vsel %vm47_vm0, %v2590_v15, 0.0  ;;  %2206 = vmatpush3.bf16.msra.mxu0 %v2203_v10 }
 0x70d   :  { %1639 = vadd.xlane.f32.xlu1 %v1638_v17  ;;  %v1635_v18 = vsel %vm47_vm0, %v2593_v16, 0.0 }
 0x70e   :  { %1636 = vadd.xlane.f32.xlu0 %v1635_v18 }
 0x79a   :  { %v1640_v19 = vpop.xlane.xlu1 %1639 }
 0x79b   :  { %v1642_v20 = vmul.f32 0.03125, %v1640_v19  ;;  %v1637_v45 = vpop.xlane.xlu0 %1636 }
 0x79c   :  { %v1641_v21 = vmul.f32 0.03125, %v1637_v45 }
 0x79d   :  { %v1644_v22 = vsub.f32 %v2590_v15, %v1642_v20 }
 0x79e   :  { %v1643_v1 = vsub.f32 %v2593_v16, %v1641_v21 }
 0x79f   :  { %v1646_v24 = vmul.f32 %v1644_v22, %v1644_v22 }
 0x7a0   :  { %v1645_v23 = vmul.f32 %v1643_v1, %v1643_v1 }
 0x7a1   :  { %v1650_v25 = vsel %vm47_vm0, %v1646_v24, 0.0 }
 0x7a2   :  { %v1647_v0 = vsel %vm47_vm0, %v1645_v23, 0.0 }
 0x7a3   :  { %1648 = vadd.xlane.f32.xlu0 %v1647_v0 }
 0x7a7   :  { %1651 = vadd.xlane.f32.xlu0 %v1650_v25  ;;  %v1934_v25 = vld [vmem:[%s2706_s12] ss:$0 sm:$0xff] }
 0x830   :  { %v1649_v42 = vpop.xlane.xlu0 %1648 }
 0x831   :  { %v1653_v43 = vmul.f32 0.03125, %v1649_v42 }
 0x833   :  { %v1655_v46 = vadd.f32 1e-05, %v1653_v43 }
 0x834   :  { %v1652_v47 = vpop.xlane.xlu0 %1651 }
 0x835   :  { %2261 = vrsqrt.f32 %v1655_v46  ;;  %v1654_v48 = vmul.f32 0.03125, %v1652_v47 }
 0x837   :  { %v1656_v49 = vadd.f32 1e-05, %v1654_v48 }
 0x839   :  { %2263 = vrsqrt.f32 %v1656_v49 }
 0x83f   :  { %v2262_v50 = vpop.eup %2261 }
 0x840   :  { %v1659_v51 = vmul.f32 %v2262_v50, %v1643_v1 }
 0x842   :  { %v1668_v53 = vmul.f32 %v1929_v40, %v1659_v51 }
 0x843   :  { %v2264_v54 = vpop.eup %2263 }
 0x844   :  { %v1660_v55 = vmul.f32 %v2264_v54, %v1644_v22  ;;  %v1677_v56 = vadd.f32 %v1930_v52, %v1668_v53 }
 0x846   :  { %v1669_v57 = vmul.f32 %v1929_v40, %v1660_v55  ;;  %2113 = vmatprep.mubr.msk.f32.mxu1 %vm47_vm0, %v1677_v56 }
 0x848   :  { %v1678_v58 = vadd.f32 %v1930_v52, %v1669_v57 }
 0x84a   :  { %2114 = vmatmul.mubr.msk.f32.vlgmr.msra.gmra.mrb[22].mxu1 %vm47_vm0, %v1678_v58 }
 0x91d   :  { %v2115_v12 = vpop.f32.mrb[22].mxu1 }
 0x91e   :  { %v1768_v13 = vadd.f32 %v2115_v12, %v1931_v11  ;;  %v1762_v14 = vpop.f32.mrb[23].mxu1 }
 0x91f   :  { %v1763_v17 = vadd.f32 %v1931_v11, %v1762_v14 }
 0x920   :  { %v1774_v18 = vmul.f32 0.70710677, %v1768_v13  ;;  %v1772_v23 = vmul.f32 0.5, %v1768_v13 }
 0x921   :  { %v1773_v19 = vmul.f32 0.70710677, %v1763_v17  ;;  %v1771_v22 = vmul.f32 0.5, %v1763_v17 }
 0x922   :  { %2265 = verf.f32 %v1774_v18 }
 0x923   :  { %2267 = verf.f32 %v1773_v19 }
 0x92c   :  { %v2266_v20 = vpop.eup %2265 }
 0x92d   :  { %v2268_v45 = vpop.eup %2267  ;;  %v1778_v21 = vadd.f32 1.0, %v2266_v20 }
 0x92e   :  { %v1777_v1 = vadd.f32 1.0, %v2268_v45 }
 0x92f   :  { %v1780_v24 = vmul.f32 %v1778_v21, %v1772_v23 }
 0x930   :  { %v1779_v0 = vmul.f32 %v1777_v1, %v1771_v22 }
 0x932   :  { %2148 = vmatprep.mubr.f32.mxu0 %v1779_v0 }
 0x933   :  { %2149 = vmatmul.mubr.f32.vlgmr.msra.gmra.mrb[14].mxu0 %v1780_v24 }
 0xa06   :  { %v2150_v26 = vpop.f32.mrb[14].mxu0 }
 0xa07   :  { %v1876_v27 = vadd.f32 %v2150_v26, %v1934_v25  ;;  %v1870_v28 = vpop.f32.mrb[15].mxu0 }
 0xa08   :  { %v1871_v29 = vadd.f32 %v1934_v25, %v1870_v28 }
 0xa09   :  { %v1880_v30 = vadd.f32 %v1876_v27, %v2590_v15 }
 0xa0a   :  { %v1879_v31 = vadd.f32 %v1871_v29, %v2593_v16 }
 0xa0b   :  { %1882 = vst.msk [vmem:[#allocation3 + $0x8] sm:$0xff] %vm47_vm0, %v1880_v30 }
 0xa0c   :  { %1881 = vst.msk [vmem:[#allocation3] sm:$0xff] %vm47_vm0, %v1879_v31 }
 0xa0d   :  { %2280 = shalt.err (!%p2277_p4)
}
 0xa0e   :  { %s2281_s6 = scalar_lea.hbm %s2707_s13, 256 }
 0xa0f   :  { %p2282_p5 = scmp.ne.s32.totalorder %s2707_s13, %s2281_s6  ;;  %p2285_p6 = scmp.lt.u32.totalorder %s2281_s6, %s2707_s13 }
 0xa11   :  { %p2287_p7 = pnand %p2285_p6, %p2282_p5 }
 0xa13   :  { %2290 = shalt.err (!%p2287_p7)
}
 0xa14   :  { %s2310_s0 = smov 128  }
 0xa15   :  { %1894 = dma.vmem_to_hbm [thread:$0]  %s1889_s2, 256, %s2707_s13, [#allocation4], %s2310_s0, %s2310_s0, %s2306_s18  }
 0xa16   :  { %2291 = dma.done.wait [#allocation4], 256  }
 0xa17   :  { %2292 = vsyncadd [#allocation4], 4294967040 }
 0xa18   :  { %1898 = vsyncpa [#allocation4], 1 }

// kernel: tpu_custom_call.1
= control target key start
LH: loop header
LB: loop body
LE: loop exit
PB: predicated region body
PF: predicated region fallthrough
CT: control target
= control target key end

     0   :  { %vm47_vm0 = vcmask 261120   ;;  %s2694_s0 = inlined_call_operand.vmem [shape: f32[16,32], index: 0, kind: input, shape index: {}]   ;;  %s2695_s1 = inlined_call_operand.vmem [shape: f32[16,32], index: 1, kind: input, shape index: {}]   ;;  %s2696_s2 = inlined_call_operand.vmem [shape: f32[16,32], index: 2, kind: input, shape index: {}]   ;;  %s2697_s3 = inlined_call_operand.vmem [shape: f32[32,96], index: 3, kind: input, shape index: {}]   ;;  %s2698_s4 = inlined_call_operand.vmem [shape: f32[1,96], index: 4, kind: input, shape index: {}]   ;;  %s2699_s5 = inlined_call_operand.vmem [shape: f32[32,32], index: 5, kind: input, shape index: {}]   ;;  %s2700_s6 = inlined_call_operand.vmem [shape: f32[1,32], index: 6, kind: input, shape index: {}]   ;;  %s2701_s7 = inlined_call_operand.vmem [shape: f32[1,32], index: 7, kind: input, shape index: {}]   ;;  %s2702_s8 = inlined_call_operand.vmem [shape: f32[1,32], index: 8, kind: input, shape index: {}]   ;;  %s2703_s9 = inlined_call_operand.vmem [shape: f32[32,128], index: 9, kind: input, shape index: {}]   ;;  %s2704_s10 = inlined_call_operand.vmem [shape: f32[1,128], index: 10, kind: input, shape index: {}]   ;;  %s2705_s11 = inlined_call_operand.vmem [shape: f32[128,32], index: 11, kind: input, shape index: {}]   ;;  %s2706_s12 = inlined_call_operand.vmem [shape: f32[1,32], index: 12, kind: input, shape index: {}]   ;;  %s2707_s13 = inlined_call_operand.hbm [shape: f32[16,32], index: 13, kind: output, shape index: {}]  }
   0x1   :  { %v2384_v0 = vld [vmem:[%s2694_s0] sm:$0xff]  ;;  %v2389_v1 = vld [vmem:[%s2694_s0 + $0x8] sm:$0xff] }
   0x2   :  { %18 = vsyncpa [#allocation4], 0  ;;  %v48_v2 = vsel %vm47_vm0, %v2384_v0, 0.0  ;;  %v51_v3 = vsel %vm47_vm0, %v2389_v1, 0.0  ;;  %v85_v14 = vld [vmem:[%s2697_s3] sm:$0xff]  ;;  %v86_v15 = vld [vmem:[%s2697_s3 + $0x8] sm:$0xff] }
   0x3   :  { %49 = vadd.xlane.f32.xlu0 %v48_v2  ;;  %v87_v16 = vld [vmem:[%s2697_s3 + $0x10] sm:$0xff]  ;;  %v2151_v17 = vpack.c.bf16 %v86_v15, %v85_v14  ;;  %v88_v18 = vld [vmem:[%s2697_s3 + $0x18] sm:$0xff]  ;;  %v75_v26 = vld [vmem:[%s2695_s1] sm:$0xff]  ;;  %v2293_v40 = vmov 0.0   ;;  %vm2294_vm1 = vmmov 0   ;;  %s2295_s26 = smov 88  }
   0x4   :  { %v2155_v19 = vpack.c.bf16 %v88_v18, %v87_v16  ;;  %v77_v27 = vadd.f32 1.0, %v75_v26  ;;  %v76_v29 = vld [vmem:[%s2695_s1 + $0x8] sm:$0xff]  ;;  %v81_v31 = vld [vmem:[%s2696_s2] sm:$0xff]  ;;  %2024 = vmatprep.subr.mxu0 %v2293_v40  ;;  %2026 = vmatprep.mubr.msk.f32.mxu0 %vm2294_vm1, %v2293_v40  ;;  %s2296_s27 = smov 96   ;;  %s2297_s28 = smov 120   ;;  %vm180_vm2 = vcmask 64512  }
   0x5   :  { %2152 = vmatprep.subr.bf16.mxu1 %v2151_v17  ;;  %v78_v33 = vadd.f32 1.0, %v76_v29  ;;  %v82_v37 = vld [vmem:[%s2696_s2 + $0x8] sm:$0xff]  ;;  %v1899_v41 = vld [vmem:[%s2698_s4] ss:$0 sm:$0xff]  ;;  %s2298_s0 = smov 112   ;;  %s2299_s29 = smov 80  }
   0x6   :  { %2154 = vmatpush3.bf16.msra.mxu1 %v2151_v17  ;;  %s2300_s4 = smov 104   ;;  %s2301_s30 = smov 72   ;;  %vm514_vm3 = vcmask 130112   ;;  %vm686_vm4 = vcmask 195712   ;;  %vm858_vm5 = vcmask 261312  }
   0x7   :  { %52 = vadd.xlane.f32.xlu0 %v51_v3  ;;  %2156 = vmatprep.subr.bf16.mxu1 %v2155_v19  ;;  %s2302_s14 = smov 64   ;;  %s2303_s15 = smov 48  }
   0x8   :  { %s2304_s16 = smov 40   ;;  %s2305_s17 = smov 56  }
   0x9   :  { %s2306_s18 = smov 8   ;;  %s2307_s19 = smov 16  }
   0xa   :  { %2158 = vmatpush3.bf16.msra.mxu1 %v2155_v19  ;;  %s2308_s20 = smov 24   ;;  %s2309_s1 = smov [#allocation3]  }
   0xb   :  { %2014 = vmatprep.subr.mxu1 %v2293_v40  ;;  %s1888_s2 = sshll.u32 %s2309_s1, 4  ;;  %s1889_s2 = int_to_ptr.vmem [resolvable:$true] %s1888_s2 }
   0xc   :  { %p2274_p1 = scmp.lt.s32.totalorder %s1889_s2, %s1889_s2 }
  0x90   :  { %v50_v4 = vpop.xlane.xlu0 %49 }
  0x91   :  { %v55_v5 = vmul.f32 0.03125, %v50_v4 }
  0x93   :  { %v57_v6 = vsub.f32 %v2384_v0, %v55_v5 }
  0x94   :  { %v53_v7 = vpop.xlane.xlu0 %52 }
  0x95   :  { %v56_v8 = vmul.f32 0.03125, %v53_v7  ;;  %v59_v9 = vmul.f32 %v57_v6, %v57_v6 }
  0x97   :  { %v58_v10 = vsub.f32 %v2389_v1, %v56_v8  ;;  %v61_v11 = vsel %vm47_vm0, %v59_v9, 0.0 }
  0x98   :  { %62 = vadd.xlane.f32.xlu1 %v61_v11 }
  0x99   :  { %v60_v12 = vmul.f32 %v58_v10, %v58_v10 }
  0x9b   :  { %v64_v13 = vsel %vm47_vm0, %v60_v12, 0.0 }
  0x9c   :  { %65 = vadd.xlane.f32.xlu1 %v64_v13 }
 0x125   :  { %v63_v20 = vpop.xlane.xlu1 %62 }
 0x126   :  { %v67_v21 = vmul.f32 0.03125, %v63_v20 }
 0x128   :  { %v69_v22 = vadd.f32 1e-05, %v67_v21 }
 0x129   :  { %v66_v23 = vpop.xlane.xlu1 %65 }
 0x12a   :  { %2225 = vrsqrt.f32 %v69_v22  ;;  %v68_v24 = vmul.f32 0.03125, %v66_v23 }
 0x12c   :  { %v70_v25 = vadd.f32 1e-05, %v68_v24 }
 0x12e   :  { %2227 = vrsqrt.f32 %v70_v25 }
 0x134   :  { %v2226_v28 = vpop.eup %2225 }
 0x135   :  { %v73_v30 = vmul.f32 %v2226_v28, %v57_v6 }
 0x137   :  { %v79_v32 = vmul.f32 %v77_v27, %v73_v30 }
 0x138   :  { %v2228_v34 = vpop.eup %2227 }
 0x139   :  { %v83_v35 = vadd.f32 %v81_v31, %v79_v32  ;;  %v74_v36 = vmul.f32 %v2228_v34, %v58_v10 }
 0x13b   :  { %2011 = vmatprep.mubr.msk.f32.mxu1 %vm47_vm0, %v83_v35  ;;  %v80_v38 = vmul.f32 %v78_v33, %v74_v36 }
 0x13d   :  { %v84_v39 = vadd.f32 %v82_v37, %v80_v38 }
 0x13f   :  { %2012 = vmatmul.mubr.msk.f32.vlgmr.msra.gmra.mrb[0].mxu1 %vm47_vm0, %v84_v39 }
 0x140   :  { %2016 = vmatprep.mubr.msk.f32.mxu1 %vm2294_vm1, %v2293_v40 }
 0x212   :  { %v2013_v42 = vpop.f32.mrb[0].mxu1 }
 0x213   :  { %v168_v43 = vpop.f32.mrb[1].mxu1  ;;  %v2442_v45 = vadd.f32 %v2013_v42, %v1899_v41 }
 0x214   :  { %v2434_v44 = vadd.f32 %v1899_v41, %v168_v43 }
 0x216   :  { %346 = vrot.lane.b32.xlu1 %v2434_v44, %s2295_s26  ;;  %178 = vrot.lane.b32.xlu0 %v2434_v44, %s2296_s27 }
 0x21a   :  { %344 = vrot.lane.b32.xlu1 %v2434_v44, %s2297_s28  ;;  %516 = vrot.lane.b32.xlu0 %v2434_v44, %s2298_s0 }
 0x21e   :  { %518 = vrot.lane.b32.xlu1 %v2434_v44, %s2299_s29  ;;  %688 = vrot.lane.b32.xlu0 %v2434_v44, %s2300_s4 }
 0x222   :  { %690 = vrot.lane.b32.xlu1 %v2434_v44, %s2301_s30  ;;  %1028 = vrot.lane.b32.xlu0 %v2442_v45, %s2295_s26 }
 0x226   :  { %861 = vrot.lane.b32.xlu1 %v2442_v45, %s2296_s27  ;;  %1199 = vrot.lane.b32.xlu0 %v2442_v45, %s2299_s29 }
 0x22a   :  { %1026 = vrot.lane.b32.xlu1 %v2442_v45, %s2297_s28  ;;  %1370 = vrot.lane.b32.xlu0 %v2442_v45, %s2301_s30 }
 0x22e   :  { %1197 = vrot.lane.b32.xlu1 %v2442_v45, %s2298_s0 }
 0x232   :  { %1368 = vrot.lane.b32.xlu1 %v2442_v45, %s2300_s4 }
 0x288   :  { %v347_v46 = vpop.permute.xlu1 %346  ;;  %v179_v47 = vpop.permute.xlu0 %178 }
 0x289   :  { %2015 = vmatpush3.xpose.msk.msra.mxu1 %vm180_vm2, %v179_v47  ;;  %2025 = vmatpush3.xpose.msk.msra.mxu0 %vm180_vm2, %v347_v46 }
 0x28a   :  { %2034 = vmatprep.subr.mxu0 %v2293_v40  ;;  %2019 = vmatprep.subr.mxu1 %v2293_v40 }
 0x28c   :  { %v345_v48 = vpop.permute.xlu1 %344  ;;  %2017 = vmatmul.mubr.msk.f32.vlgmr.msra.gmra.mrb[2].mxu1 %vm180_vm2, %v2434_v44  ;;  %v517_v49 = vpop.permute.xlu0 %516 }
 0x28d   :  { %2027 = vmatmul.mubr.msk.f32.vlgmr.msra.gmra.mrb[0].mxu0 %vm180_vm2, %v345_v48  ;;  %2021 = vmatprep.mubr.msk.f32.mxu1 %vm2294_vm1, %v2293_v40 }
 0x28e   :  { %2036 = vmatprep.mubr.msk.f32.mxu0 %vm2294_vm1, %v2293_v40 }
 0x290   :  { %v519_v50 = vpop.permute.xlu1 %518  ;;  %v689_v51 = vpop.permute.xlu0 %688 }
 0x291   :  { %2035 = vmatpush3.xpose.msk.msra.mxu0 %vm180_vm2, %v519_v50 }
 0x292   :  { %2044 = vmatprep.subr.mxu0 %v2293_v40 }
 0x294   :  { %v691_v52 = vpop.permute.xlu1 %690  ;;  %2037 = vmatmul.mubr.msk.f32.vlgmr.msra.gmra.mrb[2].mxu0 %vm180_vm2, %v517_v49  ;;  %v1029_v53 = vpop.permute.xlu0 %1028 }
 0x295   :  { %2045 = vmatpush3.xpose.msk.msra.mxu0 %vm180_vm2, %v691_v52  ;;  %2046 = vmatprep.mubr.msk.f32.mxu0 %vm2294_vm1, %v2293_v40 }
 0x296   :  { %2054 = vmatprep.subr.mxu0 %v2293_v40 }
 0x298   :  { %v862_v54 = vpop.permute.xlu1 %861  ;;  %2047 = vmatmul.mubr.msk.f32.vlgmr.msra.gmra.mrb[4].mxu0 %vm180_vm2, %v689_v51  ;;  %v1200_v56 = vpop.permute.xlu0 %1199 }
 0x299   :  { %2055 = vmatpush3.xpose.msk.msra.mxu0 %vm180_vm2, %v862_v54  ;;  %2056 = vmatprep.mubr.msk.f32.mxu0 %vm2294_vm1, %v2293_v40 }
 0x29a   :  { %2064 = vmatprep.subr.mxu0 %v2293_v40 }
 0x29c   :  { %v1027_v55 = vpop.permute.xlu1 %1026  ;;  %2057 = vmatmul.mubr.msk.f32.vlgmr.msra.gmra.mrb[6].mxu0 %vm180_vm2, %v2442_v45  ;;  %v1371_v58 = vpop.permute.xlu0 %1370 }
 0x29d   :  { %2065 = vmatpush3.xpose.msk.msra.mxu0 %vm180_vm2, %v1029_v53  ;;  %2066 = vmatprep.mubr.msk.f32.mxu0 %vm2294_vm1, %v2293_v40 }
 0x29e   :  { %2074 = vmatprep.subr.mxu0 %v2293_v40 }
 0x2a0   :  { %2067 = vmatmul.mubr.msk.f32.vlgmr.msra.gmra.mrb[8].mxu0 %vm180_vm2, %v1027_v55  ;;  %v1198_v57 = vpop.permute.xlu1 %1197 }
 0x2a1   :  { %2075 = vmatpush3.xpose.msk.msra.mxu0 %vm180_vm2, %v1200_v56  ;;  %2076 = vmatprep.mubr.msk.f32.mxu0 %vm2294_vm1, %v2293_v40 }
 0x2a2   :  { %2084 = vmatprep.subr.mxu0 %v2293_v40 }
 0x2a4   :  { %2077 = vmatmul.mubr.msk.f32.vlgmr.msra.gmra.mrb[10].mxu0 %vm180_vm2, %v1198_v57  ;;  %v1369_v59 = vpop.permute.xlu1 %1368 }
 0x2a5   :  { %2085 = vmatpush3.xpose.msk.msra.mxu0 %vm180_vm2, %v1371_v58  ;;  %2086 = vmatprep.mubr.msk.f32.mxu0 %vm2294_vm1, %v2293_v40 }
 0x2a8   :  { %2087 = vmatmul.mubr.msk.f32.vlgmr.msra.gmra.mrb[12].mxu0 %vm180_vm2, %v1369_v59 }
 0x35f   :  { %v251_v60 = vpop.f32.mrb[2].mxu1 }
 0x360   :  { %v255_v61 = vmul.f32 0.35355338, %v251_v60  ;;  %v2018_v62 = vpop.f32.mrb[3].mxu1  ;;  %v418_v63 = vpop.f32.mrb[0].mxu0 }
 0x361   :  { %v422_v2 = vmul.f32 0.35355338, %v418_v63  ;;  %v2028_v3 = vpop.f32.mrb[1].mxu0 }
 0x362   :  { %v256_v4 = vsel %vm180_vm2, %v255_v61, -inf }
 0x363   :  { %257 = vmax.xlane.f32.xlu0 %v256_v4  ;;  %v423_v5 = vsel %vm180_vm2, %v422_v2, -inf }
 0x364   :  { %424 = vmax.xlane.f32.xlu1 %v423_v5 }
 0x367   :  { %v590_v6 = vpop.f32.mrb[2].mxu0 }
 0x368   :  { %v2493_v7 = vmul.f32 0.35355338, %v590_v6  ;;  %v2038_v8 = vpop.f32.mrb[3].mxu0 }
 0x36a   :  { %v595_v9 = vsel %vm180_vm2, %v2493_v7, -inf }
 0x36b   :  { %596 = vmax.xlane.f32.xlu0 %v595_v9  ;;  %v762_v10 = vpop.f32.mrb[4].mxu0 }
 0x36c   :  { %v766_v11 = vmul.f32 0.35355338, %v762_v10  ;;  %v2048_v12 = vpop.f32.mrb[5].mxu0 }
 0x36e   :  { %v767_v13 = vsel %vm180_vm2, %v766_v11, -inf }
 0x36f   :  { %768 = vmax.xlane.f32.xlu0 %v767_v13  ;;  %v933_v14 = vpop.f32.mrb[6].mxu0 }
 0x370   :  { %v937_v15 = vmul.f32 0.35355338, %v933_v14  ;;  %v2058_v16 = vpop.f32.mrb[7].mxu0 }
 0x372   :  { %v938_v17 = vsel %vm180_vm2, %v937_v15, -inf }
 0x373   :  { %939 = vmax.xlane.f32.xlu0 %v938_v17  ;;  %v1100_v18 = vpop.f32.mrb[8].mxu0 }
 0x374   :  { %v1104_v19 = vmul.f32 0.35355338, %v1100_v18  ;;  %v2068_v20 = vpop.f32.mrb[9].mxu0 }
 0x376   :  { %v1105_v21 = vsel %vm180_vm2, %v1104_v19, -inf }
 0x377   :  { %1106 = vmax.xlane.f32.xlu1 %v1105_v21  ;;  %v1271_v22 = vpop.f32.mrb[10].mxu0 }
 0x378   :  { %v1275_v23 = vmul.f32 0.35355338, %v1271_v22  ;;  %v2078_v24 = vpop.f32.mrb[11].mxu0 }
 0x37a   :  { %v1276_v25 = vsel %vm180_vm2, %v1275_v23, -inf }
 0x37b   :  { %1277 = vmax.xlane.f32.xlu0 %v1276_v25  ;;  %v1442_v26 = vpop.f32.mrb[12].mxu0 }
 0x37c   :  { %v2088_v27 = vpop.f32.mrb[13].mxu0  ;;  %v1446_v28 = vmul.f32 0.35355338, %v1442_v26 }
 0x37e   :  { %v1447_v29 = vsel %vm180_vm2, %v1446_v28, -inf }
 0x388   :  { %267 = vrot.lane.b32.xlu1 %v2434_v44, %s2302_s14 }
 0x3ac   :  { %1448 = vmax.xlane.f32.xlu1 %v1447_v29 }
 0x3bd   :  { %606 = vrot.lane.b32.xlu1 %v2434_v44, %s2303_s15 }
 0x3c1   :  { %778 = vrot.lane.b32.xlu1 %v2434_v44, %s2304_s16 }
 0x3c5   :  { %949 = vrot.lane.b32.xlu1 %v2442_v45, %s2302_s14 }
 0x3f0   :  { %v258_v30 = vpop.xlane.xlu0 %257 }
 0x3f1   :  { %v259_v31 = vsub.f32 %v255_v61, %v258_v30  ;;  %v425_v32 = vpop.xlane.xlu1 %424 }
 0x3f2   :  { %v426_v33 = vsub.f32 %v422_v2, %v425_v32 }
 0x3f3   :  { %v260_v34 = vmul.f32 1.442695, %v259_v31 }
 0x3f4   :  { %v427_v35 = vmul.f32 1.442695, %v426_v33 }
 0x3f5   :  { %2229 = vpow2.f32 %v260_v34 }
 0x3f6   :  { %2231 = vpow2.f32 %v427_v35 }
 0x3f8   :  { %v597_v36 = vpop.xlane.xlu0 %596 }
 0x3f9   :  { %v598_v51 = vsub.f32 %v2493_v7, %v597_v36 }
 0x3fb   :  { %v599_v53 = vmul.f32 1.442695, %v598_v51  ;;  %v1541_v51 = vld [vmem:[%s2699_s5] sm:$0xff] }
 0x3fc   :  { %v769_v37 = vpop.xlane.xlu0 %768 }
 0x3fd   :  { %v770_v38 = vsub.f32 %v766_v11, %v769_v37 }
 0x3ff   :  { %v2230_v39 = vpop.eup %2229  ;;  %v771_v41 = vmul.f32 1.442695, %v770_v38 }
 0x400   :  { %v2508_v42 = vpop.eup %2231  ;;  %v262_v43 = vsel %vm180_vm2, %v2230_v39, 0.0  ;;  %v940_v52 = vpop.xlane.xlu0 %939 }
 0x401   :  { %2233 = vpow2.f32 %v771_v41  ;;  %263 = vadd.xlane.f32.xlu0 %v262_v43  ;;  %v429_v46 = vsel %vm180_vm2, %v2508_v42, 0.0  ;;  %v941_v54 = vsub.f32 %v937_v15, %v940_v52  ;;  %v1542_v52 = vld [vmem:[%s2699_s5 + $0x8] sm:$0xff] }
 0x402   :  { %430 = vadd.xlane.f32.xlu1 %v429_v46  ;;  %2235 = vpow2.f32 %v599_v53  ;;  %v2159_v53 = vpack.c.bf16 %v1542_v52, %v1541_v51  ;;  %v1930_v52 = vld [vmem:[%s2702_s8] ss:$0 sm:$0xff] }
 0x403   :  { %v942_v56 = vmul.f32 1.442695, %v941_v54 }
 0x404   :  { %v1107_v47 = vpop.xlane.xlu1 %1106 }
 0x405   :  { %2237 = vpow2.f32 %v942_v56  ;;  %v1108_v58 = vsub.f32 %v1104_v19, %v1107_v47  ;;  %v1544_v56 = vld [vmem:[%s2699_s5 + $0x18] sm:$0xff] }
 0x407   :  { %v1109_v60 = vmul.f32 1.442695, %v1108_v58 }
 0x408   :  { %v268_v48 = vpop.permute.xlu1 %267  ;;  %v1278_v55 = vpop.xlane.xlu0 %1277 }
 0x409   :  { %2020 = vmatpush3.msra.mxu1 %v268_v48  ;;  %v1279_v57 = vsub.f32 %v1275_v23, %v1278_v55  ;;  %v1543_v55 = vld [vmem:[%s2699_s5 + $0x10] sm:$0xff]  ;;  %s2269_s5 = scalar_lea.vmem %s1889_s2, 256 }
 0x40a   :  { %2029 = vmatprep.subr.mxu1 %v2293_v40  ;;  %v2163_v58 = vpack.c.bf16 %v1544_v56, %v1543_v55  ;;  %p2270_p0 = scmp.ne.s32.totalorder %s1889_s2, %s2269_s5  ;;  %p2275_p2 = scmp.lt.s32.totalorder %s2269_s5, %s2269_s5 }
 0x40b   :  { %v2514_v49 = vpop.eup %2233  ;;  %v1280_v59 = vmul.f32 1.442695, %v1279_v57 }
 0x40c   :  { %v773_v50 = vsel %vm180_vm2, %v2514_v49, 0.0  ;;  %v2236_v61 = vpop.eup %2235  ;;  %p2276_p3 = por %p2275_p2, %p2274_p1 }
 0x40d   :  { %774 = vadd.xlane.f32.xlu1 %v773_v50  ;;  %2239 = vpow2.f32 %v1280_v59 }
 0x40e   :  { %2241 = vpow2.f32 %v1109_v60  ;;  %p2277_p4 = pnand %p2276_p3, %p2270_p0 }
 0x40f   :  { %v2238_v62 = vpop.eup %2237 }
 0x410   :  { %v944_v2 = vsel %vm180_vm2, %v2238_v62, 0.0 }
 0x417   :  { %434 = vrot.lane.b32.xlu0 %v2434_v44, %s2305_s17  ;;  %v601_v44 = vsel %vm180_vm2, %v2236_v61, 0.0  ;;  %v2523_v3 = vpop.eup %2239 }
 0x418   :  { %v1282_v6 = vsel %vm180_vm2, %v2523_v3, 0.0  ;;  %v2242_v7 = vpop.eup %2241 }
 0x419   :  { %v1111_v8 = vsel %vm180_vm2, %v2242_v7, 0.0 }
 0x41e   :  { %1116 = vrot.lane.b32.xlu1 %v2442_v45, %s2305_s17 }
 0x436   :  { %602 = vadd.xlane.f32.xlu0 %v601_v44 }
 0x439   :  { %v1449_v63 = vpop.xlane.xlu1 %1448 }
 0x43a   :  { %v1450_v4 = vsub.f32 %v1446_v28, %v1449_v63  ;;  %945 = vadd.xlane.f32.xlu0 %v944_v2 }
 0x43c   :  { %v1451_v5 = vmul.f32 1.442695, %v1450_v4 }
 0x43d   :  { %v607_v11 = vpop.permute.xlu1 %606 }
 0x43e   :  { %2243 = vpow2.f32 %v1451_v5  ;;  %1283 = vadd.xlane.f32.xlu0 %v1282_v6 }
 0x441   :  { %v779_v12 = vpop.permute.xlu1 %778 }
 0x442   :  { %1112 = vadd.xlane.f32.xlu1 %v1111_v8 }
 0x445   :  { %v950_v13 = vpop.permute.xlu1 %949 }
 0x448   :  { %v2528_v9 = vpop.eup %2243 }
 0x449   :  { %v1453_v10 = vsel %vm180_vm2, %v2528_v9, 0.0 }
 0x44a   :  { %1454 = vadd.xlane.f32.xlu0 %v1453_v10  ;;  %v1926_v10 = vld [vmem:[%s2700_s6] ss:$0 sm:$0xff] }
 0x453   :  { %1458 = vrot.lane.b32.xlu1 %v2442_v45, %s2304_s16 }
 0x460   :  { %1287 = vrot.lane.b32.xlu0 %v2442_v45, %s2303_s15 }
 0x48e   :  { %v264_v14 = vpop.xlane.xlu0 %263 }
 0x48f   :  { %2245 = vrcp.f32 %v264_v14  ;;  %v431_v15 = vpop.xlane.xlu1 %430 }
 0x490   :  { %2247 = vrcp.f32 %v431_v15 }
 0x492   :  { %v435_v19 = vpop.permute.xlu0 %434 }
 0x499   :  { %v2246_v16 = vpop.eup %2245 }
 0x49a   :  { %v266_v17 = vmul.f32 %v2246_v16, %v2230_v39  ;;  %v2248_v18 = vpop.eup %2247  ;;  %v775_v45 = vpop.xlane.xlu1 %774 }
 0x49b   :  { %v433_v20 = vmul.f32 %v2248_v18, %v2508_v42 }
 0x49c   :  { %2022 = vmatmul.mubr.msk.f32.vlgmr.msra.gmra.mrb[4].mxu1 %vm180_vm2, %v266_v17 }
 0x49d   :  { %2030 = vmatpush3.msra.mxu1 %v435_v19  ;;  %2031 = vmatprep.mubr.msk.f32.mxu1 %vm2294_vm1, %v2293_v40 }
 0x49e   :  { %2039 = vmatprep.subr.mxu1 %v2293_v40  ;;  %v1117_v23 = vpop.permute.xlu1 %1116 }
 0x4a0   :  { %2032 = vmatmul.mubr.msk.f32.vlgmr.msra.gmra.mrb[6].mxu1 %vm180_vm2, %v433_v20 }
 0x4a1   :  { %2040 = vmatpush3.msra.mxu1 %v607_v11  ;;  %2041 = vmatprep.mubr.msk.f32.mxu1 %vm2294_vm1, %v2293_v40 }
 0x4a2   :  { %2049 = vmatprep.subr.mxu1 %v2293_v40 }
 0x4c3   :  { %v603_v21 = vpop.xlane.xlu0 %602 }
 0x4c4   :  { %2249 = vrcp.f32 %v603_v21 }
 0x4c5   :  { %2251 = vrcp.f32 %v775_v45 }
 0x4c7   :  { %v946_v22 = vpop.xlane.xlu0 %945 }
 0x4c8   :  { %2253 = vrcp.f32 %v946_v22 }
 0x4cb   :  { %v1284_v26 = vpop.xlane.xlu0 %1283 }
 0x4ce   :  { %v2250_v24 = vpop.eup %2249 }
 0x4cf   :  { %v605_v25 = vmul.f32 %v2250_v24, %v2236_v61  ;;  %v1113_v27 = vpop.xlane.xlu1 %1112  ;;  %v2252_v28 = vpop.eup %2251 }
 0x4d0   :  { %2255 = vrcp.f32 %v1113_v27  ;;  %v777_v29 = vmul.f32 %v2252_v28, %v2514_v49  ;;  %v1680_v27 = vld [vmem:[%s2703_s9 + $0x8] sm:$0xff] }
 0x4d1   :  { %2042 = vmatmul.mubr.msk.f32.vlgmr.msra.gmra.mrb[8].mxu1 %vm180_vm2, %v605_v25  ;;  %2257 = vrcp.f32 %v1284_v26  ;;  %v1679_v26 = vld [vmem:[%s2703_s9] sm:$0xff] }
 0x4d2   :  { %2050 = vmatpush3.msra.mxu1 %v779_v12  ;;  %2051 = vmatprep.mubr.msk.f32.mxu1 %vm2294_vm1, %v2293_v40  ;;  %v2254_v30 = vpop.eup %2253  ;;  %v2167_v28 = vpack.c.bf16 %v1680_v27, %v1679_v26 }
 0x4d3   :  { %2059 = vmatprep.subr.mxu1 %v2293_v40  ;;  %v948_v31 = vmul.f32 %v2254_v30, %v2238_v62  ;;  %v1459_v38 = vpop.permute.xlu1 %1458  ;;  %v1682_v30 = vld [vmem:[%s2703_s9 + $0x18] sm:$0xff] }
 0x4d5   :  { %2052 = vmatmul.mubr.msk.f32.vlgmr.msra.gmra.mrb[10].mxu1 %vm180_vm2, %v777_v29  ;;  %v1681_v29 = vld [vmem:[%s2703_s9 + $0x10] sm:$0xff] }
 0x4d6   :  { %2060 = vmatpush3.msra.mxu1 %v950_v13  ;;  %2061 = vmatprep.mubr.msk.f32.mxu1 %vm2294_vm1, %v2293_v40 }
 0x4d7   :  { %v1455_v32 = vpop.xlane.xlu0 %1454  ;;  %2069 = vmatprep.subr.mxu1 %v2293_v40 }
 0x4d8   :  { %2259 = vrcp.f32 %v1455_v32  ;;  %v1781_v32 = vld [vmem:[%s2705_s11] sm:$0xff] }
 0x4d9   :  { %2062 = vmatmul.mubr.msk.f32.vlgmr.msra.gmra.mrb[12].mxu1 %vm180_vm2, %v948_v31  ;;  %v2171_v31 = vpack.c.bf16 %v1682_v30, %v1681_v29 }
 0x4da   :  { %v2256_v33 = vpop.eup %2255  ;;  %2070 = vmatpush3.msra.mxu1 %v1117_v23  ;;  %2071 = vmatprep.mubr.msk.f32.mxu1 %vm2294_vm1, %v2293_v40 }
 0x4db   :  { %v1115_v34 = vmul.f32 %v2256_v33, %v2242_v7  ;;  %v1288_v35 = vpop.permute.xlu0 %1287  ;;  %2079 = vmatprep.subr.mxu1 %v2293_v40  ;;  %v2258_v36 = vpop.eup %2257  ;;  %v1782_v33 = vld [vmem:[%s2705_s11 + $0x8] sm:$0xff] }
 0x4dc   :  { %v1286_v37 = vmul.f32 %v2258_v36, %v2523_v3  ;;  %v1784_v36 = vld [vmem:[%s2705_s11 + $0x18] sm:$0xff] }
 0x4dd   :  { %2072 = vmatmul.mubr.msk.f32.vlgmr.msra.gmra.mrb[14].mxu1 %vm180_vm2, %v1115_v34  ;;  %v1783_v34 = vld [vmem:[%s2705_s11 + $0x10] sm:$0xff] }
 0x4de   :  { %2080 = vmatpush3.msra.mxu1 %v1288_v35  ;;  %2081 = vmatprep.mubr.msk.f32.mxu1 %vm2294_vm1, %v2293_v40  ;;  %v2175_v35 = vpack.c.bf16 %v1782_v33, %v1781_v32 }
 0x4df   :  { %2089 = vmatprep.subr.mxu1 %v2293_v40 }
 0x4e0   :  { %2176 = vmatprep.subr.bf16.mxu0 %v2175_v35 }
 0x4e1   :  { %2082 = vmatmul.mubr.msk.f32.vlgmr.msra.gmra.mrb[16].mxu1 %vm180_vm2, %v1286_v37  ;;  %v2179_v37 = vpack.c.bf16 %v1784_v36, %v1783_v34  ;;  %2178 = vmatpush3.bf16.msra.mxu0 %v2175_v35 }
 0x4e2   :  { %v2260_v39 = vpop.eup %2259  ;;  %2090 = vmatpush3.msra.mxu1 %v1459_v38  ;;  %2091 = vmatprep.mubr.msk.f32.mxu1 %vm2294_vm1, %v2293_v40  ;;  %v1785_v38 = vld [vmem:[%s2705_s11 + $0x20] sm:$0xff] }
 0x4e3   :  { %v1457_v41 = vmul.f32 %v2260_v39, %v2528_v9  ;;  %2160 = vmatprep.subr.bf16.mxu1 %v2159_v53  ;;  %v1786_v39 = vld [vmem:[%s2705_s11 + $0x28] sm:$0xff]  ;;  %2180 = vmatprep.subr.bf16.mxu0 %v2179_v37 }
 0x4e5   :  { %2092 = vmatmul.mubr.msk.f32.vlgmr.msra.gmra.mrb[18].mxu1 %vm180_vm2, %v1457_v41  ;;  %v2183_v41 = vpack.c.bf16 %v1786_v39, %v1785_v38  ;;  %2182 = vmatpush3.bf16.msra.mxu0 %v2179_v37 }
 0x4e6   :  { %2162 = vmatpush3.bf16.msra.mxu1 %v2159_v53 }
 0x4e7   :  { %2164 = vmatprep.subr.bf16.mxu1 %v2163_v58  ;;  %2184 = vmatprep.subr.bf16.mxu0 %v2183_v41 }
 0x4e9   :  { %2186 = vmatpush3.bf16.msra.mxu0 %v2183_v41 }
 0x4ea   :  { %2166 = vmatpush3.bf16.msra.mxu1 %v2163_v58 }
 0x4eb   :  { %2168 = vmatprep.subr.bf16.mxu1 %v2167_v28 }
 0x56f   :  { %v339_v42 = vpop.f32.mrb[4].mxu1 }
 0x570   :  { %343 = vst.msk [vmem:[#allocation2] sm:$0xff] %vm180_vm2, %v339_v42  ;;  %v2023_v43 = vpop.f32.mrb[5].mxu1 }
 0x573   :  { %v506_v46 = vpop.f32.mrb[6].mxu1 }
 0x574   :  { %511 = vrot.lane.b32.xlu0 %v506_v46, %s2306_s18  ;;  %v2033_v47 = vpop.f32.mrb[7].mxu1 }
 0x5a4   :  { %v678_v48 = vpop.f32.mrb[8].mxu1 }
 0x5a5   :  { %683 = vrot.lane.b32.xlu1 %v678_v48, %s2307_s19  ;;  %v2043_v49 = vpop.f32.mrb[9].mxu1 }
 0x5a8   :  { %v850_v50 = vpop.f32.mrb[10].mxu1 }
 0x5a9   :  { %855 = vrot.lane.b32.xlu1 %v850_v50, %s2308_s20  ;;  %v2053_v40 = vpop.f32.mrb[11].mxu1 }
 0x5aa   :  { %v1929_v40 = vld [vmem:[%s2701_s7] ss:$0 sm:$0xff] }
 0x5ac   :  { %v1021_v54 = vpop.f32.mrb[12].mxu1 }
 0x5ad   :  { %1025 = vst.msk [vmem:[#allocation2 + $0x8] sm:$0xff] %vm180_vm2, %v1021_v54  ;;  %v2063_v57 = vpop.f32.mrb[13].mxu1 }
 0x5b0   :  { %v1188_v59 = vpop.f32.mrb[14].mxu1 }
 0x5b1   :  { %1193 = vrot.lane.b32.xlu0 %v1188_v59, %s2306_s18  ;;  %v2073_v60 = vpop.f32.mrb[15].mxu1  ;;  %v1787_v59 = vld [vmem:[%s2705_s11 + $0x30] sm:$0xff] }
 0x5b2   :  { %v1788_v60 = vld [vmem:[%s2705_s11 + $0x38] sm:$0xff] }
 0x5b4   :  { %v1359_v61 = vpop.f32.mrb[16].mxu1 }
 0x5b5   :  { %1364 = vrot.lane.b32.xlu0 %v1359_v61, %s2307_s19  ;;  %v2083_v44 = vpop.f32.mrb[17].mxu1  ;;  %v2187_v61 = vpack.c.bf16 %v1788_v60, %v1787_v59 }
 0x5b6   :  { %v1789_v44 = vld [vmem:[%s2705_s11 + $0x40] sm:$0xff] }
 0x5b7   :  { %2188 = vmatprep.subr.bf16.mxu0 %v2187_v61 }
 0x5b8   :  { %v1530_v62 = vpop.f32.mrb[18].mxu1  ;;  %2190 = vmatpush3.bf16.msra.mxu0 %v2187_v61 }
 0x5b9   :  { %1535 = vrot.lane.b32.xlu1 %v1530_v62, %s2308_s20  ;;  %v2093_v63 = vpop.f32.mrb[19].mxu1  ;;  %v1790_v62 = vld [vmem:[%s2705_s11 + $0x48] sm:$0xff] }
 0x5ba   :  { %v2191_v63 = vpack.c.bf16 %v1790_v62, %v1789_v44 }
 0x5bc   :  { %2192 = vmatprep.subr.bf16.mxu0 %v2191_v63 }
 0x5bd   :  { %2194 = vmatpush3.bf16.msra.mxu0 %v2191_v63 }
 0x5e6   :  { %v512_v2 = vpop.permute.xlu0 %511 }
 0x5e7   :  { %515 = vst.msk [vmem:[#allocation2] sm:$0xff] %vm514_vm3, %v512_v2  ;;  %v1791_v2 = vld [vmem:[%s2705_s11 + $0x50] sm:$0xff] }
 0x617   :  { %v684_v3 = vpop.permute.xlu1 %683 }
 0x618   :  { %687 = vst.msk [vmem:[#allocation2] sm:$0xff] %vm686_vm4, %v684_v3  ;;  %v1792_v3 = vld [vmem:[%s2705_s11 + $0x58] sm:$0xff] }
 0x61b   :  { %v856_v4 = vpop.permute.xlu1 %855 }
 0x61c   :  { %859 = vst.msk [vmem:[#allocation2] sm:$0xff] %vm858_vm5, %v856_v4  ;;  %v2195_v4 = vpack.c.bf16 %v1792_v3, %v1791_v2 }
 0x61e   :  { %2196 = vmatprep.subr.bf16.mxu0 %v2195_v4 }
 0x61f   :  { %2198 = vmatpush3.bf16.msra.mxu0 %v2195_v4 }
 0x623   :  { %v1194_v5 = vpop.permute.xlu0 %1193  ;;  %v1539_v6 = vld [vmem:[#allocation2] sm:$0xff] }
 0x624   :  { %1196 = vst.msk [vmem:[#allocation2 + $0x8] sm:$0xff] %vm514_vm3, %v1194_v5  ;;  %2102 = vmatprep.mubr.msk.f32.mxu1 %vm47_vm0, %v1539_v6  ;;  %v1793_v5 = vld [vmem:[%s2705_s11 + $0x60] sm:$0xff]  ;;  %v1794_v6 = vld [vmem:[%s2705_s11 + $0x68] sm:$0xff] }
 0x627   :  { %v1365_v7 = vpop.permute.xlu0 %1364 }
 0x628   :  { %1367 = vst.msk [vmem:[#allocation2 + $0x8] sm:$0xff] %vm686_vm4, %v1365_v7  ;;  %v2199_v7 = vpack.c.bf16 %v1794_v6, %v1793_v5 }
 0x62a   :  { %2200 = vmatprep.subr.bf16.mxu0 %v2199_v7 }
 0x62b   :  { %v1536_v8 = vpop.permute.xlu1 %1535  ;;  %2202 = vmatpush3.bf16.msra.mxu0 %v2199_v7 }
 0x62c   :  { %1538 = vst.msk [vmem:[#allocation2 + $0x8] sm:$0xff] %vm858_vm5, %v1536_v8  ;;  %v1795_v8 = vld [vmem:[%s2705_s11 + $0x70] sm:$0xff] }
 0x633   :  { %v1540_v9 = vld [vmem:[#allocation2 + $0x8] sm:$0xff] }
 0x634   :  { %2103 = vmatmul.mubr.msk.f32.vlgmr.msra.gmra.mrb[20].mxu1 %vm47_vm0, %v1540_v9  ;;  %v1796_v9 = vld [vmem:[%s2705_s11 + $0x78] sm:$0xff] }
 0x635   :  { %2170 = vmatpush3.bf16.msra.mxu1 %v2167_v28 }
 0x636   :  { %2172 = vmatprep.subr.bf16.mxu1 %v2171_v31 }
 0x639   :  { %2174 = vmatpush3.bf16.msra.mxu1 %v2171_v31 }
 0x707   :  { %v2104_v11 = vpop.f32.mrb[20].mxu1 }
 0x708   :  { %v1630_v12 = vadd.f32 %v2104_v11, %v1926_v10  ;;  %v1624_v13 = vpop.f32.mrb[21].mxu1  ;;  %v1931_v11 = vld [vmem:[%s2704_s10] ss:$0 sm:$0xff] }
 0x709   :  { %v1625_v14 = vadd.f32 %v1926_v10, %v1624_v13  ;;  %v2203_v10 = vpack.c.bf16 %v1796_v9, %v1795_v8 }
 0x70a   :  { %v2590_v15 = vadd.f32 %v1630_v12, %v2389_v1 }
 0x70b   :  { %v2593_v16 = vadd.f32 %v1625_v14, %v2384_v0  ;;  %2204 = vmatprep.subr.bf16.mxu0 %v2203_v10 }
 0x70c   :  { %v1638_v17 = vsel %vm47_vm0, %v2590_v15, 0.0  ;;  %2206 = vmatpush3.bf16.msra.mxu0 %v2203_v10 }
 0x70d   :  { %1639 = vadd.xlane.f32.xlu1 %v1638_v17  ;;  %v1635_v18 = vsel %vm47_vm0, %v2593_v16, 0.0 }
 0x70e   :  { %1636 = vadd.xlane.f32.xlu0 %v1635_v18 }
 0x79a   :  { %v1640_v19 = vpop.xlane.xlu1 %1639 }
 0x79b   :  { %v1642_v20 = vmul.f32 0.03125, %v1640_v19  ;;  %v1637_v45 = vpop.xlane.xlu0 %1636 }
 0x79c   :  { %v1641_v21 = vmul.f32 0.03125, %v1637_v45 }
 0x79d   :  { %v1644_v22 = vsub.f32 %v2590_v15, %v1642_v20 }
 0x79e   :  { %v1643_v1 = vsub.f32 %v2593_v16, %v1641_v21 }
 0x79f   :  { %v1646_v24 = vmul.f32 %v1644_v22, %v1644_v22 }
 0x7a0   :  { %v1645_v23 = vmul.f32 %v1643_v1, %v1643_v1 }
 0x7a1   :  { %v1650_v25 = vsel %vm47_vm0, %v1646_v24, 0.0 }
 0x7a2   :  { %v1647_v0 = vsel %vm47_vm0, %v1645_v23, 0.0 }
 0x7a3   :  { %1648 = vadd.xlane.f32.xlu0 %v1647_v0 }
 0x7a7   :  { %1651 = vadd.xlane.f32.xlu0 %v1650_v25  ;;  %v1934_v25 = vld [vmem:[%s2706_s12] ss:$0 sm:$0xff] }
 0x830   :  { %v1649_v42 = vpop.xlane.xlu0 %1648 }
 0x831   :  { %v1653_v43 = vmul.f32 0.03125, %v1649_v42 }
 0x833   :  { %v1655_v46 = vadd.f32 1e-05, %v1653_v43 }
 0x834   :  { %v1652_v47 = vpop.xlane.xlu0 %1651 }
 0x835   :  { %2261 = vrsqrt.f32 %v1655_v46  ;;  %v1654_v48 = vmul.f32 0.03125, %v1652_v47 }
 0x837   :  { %v1656_v49 = vadd.f32 1e-05, %v1654_v48 }
 0x839   :  { %2263 = vrsqrt.f32 %v1656_v49 }
 0x83f   :  { %v2262_v50 = vpop.eup %2261 }
 0x840   :  { %v1659_v51 = vmul.f32 %v2262_v50, %v1643_v1 }
 0x842   :  { %v1668_v53 = vmul.f32 %v1929_v40, %v1659_v51 }
 0x843   :  { %v2264_v54 = vpop.eup %2263 }
 0x844   :  { %v1660_v55 = vmul.f32 %v2264_v54, %v1644_v22  ;;  %v1677_v56 = vadd.f32 %v1930_v52, %v1668_v53 }
 0x846   :  { %v1669_v57 = vmul.f32 %v1929_v40, %v1660_v55  ;;  %2113 = vmatprep.mubr.msk.f32.mxu1 %vm47_vm0, %v1677_v56 }
 0x848   :  { %v1678_v58 = vadd.f32 %v1930_v52, %v1669_v57 }
 0x84a   :  { %2114 = vmatmul.mubr.msk.f32.vlgmr.msra.gmra.mrb[22].mxu1 %vm47_vm0, %v1678_v58 }
 0x91d   :  { %v2115_v12 = vpop.f32.mrb[22].mxu1 }
 0x91e   :  { %v1768_v13 = vadd.f32 %v2115_v12, %v1931_v11  ;;  %v1762_v14 = vpop.f32.mrb[23].mxu1 }
 0x91f   :  { %v1763_v17 = vadd.f32 %v1931_v11, %v1762_v14 }
 0x920   :  { %v1774_v18 = vmul.f32 0.70710677, %v1768_v13  ;;  %v1772_v23 = vmul.f32 0.5, %v1768_v13 }
 0x921   :  { %v1773_v19 = vmul.f32 0.70710677, %v1763_v17  ;;  %v1771_v22 = vmul.f32 0.5, %v1763_v17 }
 0x922   :  { %2265 = verf.f32 %v1774_v18 }
 0x923   :  { %2267 = verf.f32 %v1773_v19 }
 0x92c   :  { %v2266_v20 = vpop.eup %2265 }
 0x92d   :  { %v2268_v45 = vpop.eup %2267  ;;  %v1778_v21 = vadd.f32 1.0, %v2266_v20 }
 0x92e   :  { %v1777_v1 = vadd.f32 1.0, %v2268_v45 }
 0x92f   :  { %v1780_v24 = vmul.f32 %v1778_v21, %v1772_v23 }
 0x930   :  { %v1779_v0 = vmul.f32 %v1777_v1, %v1771_v22 }
 0x932   :  { %2148 = vmatprep.mubr.f32.mxu0 %v1779_v0 }
 0x933   :  { %2149 = vmatmul.mubr.f32.vlgmr.msra.gmra.mrb[14].mxu0 %v1780_v24 }
 0xa06   :  { %v2150_v26 = vpop.f32.mrb[14].mxu0 }
 0xa07   :  { %v1876_v27 = vadd.f32 %v2150_v26, %v1934_v25  ;;  %v1870_v28 = vpop.f32.mrb[15].mxu0 }
 0xa08   :  { %v1871_v29 = vadd.f32 %v1934_v25, %v1870_v28 }
 0xa09   :  { %v1880_v30 = vadd.f32 %v1876_v27, %v2590_v15 }
 0xa0a   :  { %v1879_v31 = vadd.f32 %v1871_v29, %v2593_v16 }
 0xa0b   :  { %1882 = vst.msk [vmem:[#allocation3 + $0x8] sm:$0xff] %vm47_vm0, %v1880_v30 }
 0xa0c   :  { %1881 = vst.msk [vmem:[#allocation3] sm:$0xff] %vm47_vm0, %v1879_v31 }
 0xa0d   :  { %2280 = shalt.err (!%p2277_p4)
}
 0xa0e   :  { %s2281_s6 = scalar_lea.hbm %s2707_s13, 256 }
 0xa0f   :  { %p2282_p5 = scmp.ne.s32.totalorder %s2707_s13, %s2281_s6  ;;  %p2285_p6 = scmp.lt.u32.totalorder %s2281_s6, %s2707_s13 }
 0xa11   :  { %p2287_p7 = pnand %p2285_p6, %p2282_p5 }
 0xa13   :  { %2290 = shalt.err (!%p2287_p7)
}
 0xa14   :  { %s2310_s0 = smov 128  }
 0xa15   :  { %1894 = dma.vmem_to_hbm [thread:$0]  %s1889_s2, 256, %s2707_s13, [#allocation4], %s2310_s0, %s2310_s0, %s2306_s18  }
 0xa16   :  { %2291 = dma.done.wait [#allocation4], 256  }
 0xa17   :  { %2292 = vsyncadd [#allocation4], 4294967040 }
 0xa18   :  { %1898 = vsyncpa [#allocation4], 1 }

</bundles_post_ra>
